<compile_context>
chip_gen: v7x
topology: tpu7x:2x2x1
jax: 0.10.0
libtpu: 0.0.40
codegen_flags: <defaults>
</compile_context>

<pallas_src>
import math
import functools

import jax
import jax.numpy as jnp
from jax import lax
from jax.experimental import pallas as pl
from jax.experimental.pallas import tpu as pltpu

LANE = 128


def _round_up(n, m):
    return ((n + m - 1) // m) * m


# ----------------------------- in-kernel helpers -----------------------------

def _layernorm_padded(x, gamma, beta, d_real, eps=1e-5):
    """LayerNorm over the zero-padded last dim, PyTorch semantics (biased var, eps in rsqrt).

    Padded lanes of `x` are zero (so the full-row sum is the real-row sum); the centered
    value is explicitly masked so the two-pass variance ignores padded lanes; gamma/beta are
    zero-padded so padded lanes come out exactly zero.  All math in f32."""
    inv_d = 1.0 / d_real
    mean = jnp.sum(x, axis=-1, keepdims=True) * inv_d
    lane = lax.broadcasted_iota(jnp.int32, x.shape, x.ndim - 1)
    xc = jnp.where(lane < d_real, x - mean, 0.0)
    var = jnp.sum(xc * xc, axis=-1, keepdims=True) * inv_d
    return xc * lax.rsqrt(var + eps) * gamma + beta


def _gelu_exact(x):
    # nn.GELU() default (approximate='none'): 0.5 * x * (1 + erf(x / sqrt(2)))
    return 0.5 * x * (1.0 + lax.erf(x * (1.0 / math.sqrt(2.0))))


# ----------------------------- fused Pallas kernel ---------------------------

def fused_transformer_kernel(x_ref, ln1g_ref, ln1b_ref, wqkv_ref, wo_ref, bo_ref,
                             ln2g_ref, ln2b_ref, w1_ref, b1_ref, w2_ref, b2_ref,
                             wf_ref, bf_ref, o_ref, x_scr,
                             *, d_real, heads, dim_head):
    """One grid step = (one batch element, one transformer layer).

    Activation lives in `x_scr` (VMEM) across the depth axis; the final Linear runs and the
    output is stored only on the last depth step."""
    d = pl.program_id(1)
    last = pl.num_programs(1) - 1

    @pl.when(d == 0)
    def _():
        x_scr[...] = x_ref[0]                                   # (N, Dp) f32

    x = x_scr[...]                                              # (N, Dp) f32

    # ---------------- PreNorm attention ----------------
    xn = _layernorm_padded(x, ln1g_ref[0], ln1b_ref[0], d_real)
    xb = xn.astype(jnp.bfloat16)
    xh = jnp.broadcast_to(xb[None], (heads,) + xb.shape)        # single hoisted broadcast

    # One head-batched matmul for Q,K,V combined: (H,N,Dp) @ (H,Dp,3*dh) -> (H,N,3*dh).
    # The 1/sqrt(dh) scale is pre-folded into the Q columns of wqkv.
    qkv = jnp.einsum('hnD,hDe->hne', xh, wqkv_ref[0],
                     preferred_element_type=jnp.float32)
    qkv_b = qkv.astype(jnp.bfloat16)
    q = qkv_b[..., 0 * dim_head:1 * dim_head]                   # (H, N, dh)
    k = qkv_b[..., 1 * dim_head:2 * dim_head]
    v = qkv_b[..., 2 * dim_head:3 * dim_head]

    dots = jnp.einsum('hnd,hmd->hnm', q, k,
                      preferred_element_type=jnp.float32)       # (H, N, N) f32
    m = jnp.max(dots, axis=-1, keepdims=True)
    e = jnp.exp(dots - m)                                       # f32 (EUP)
    attn = e * pl.reciprocal(jnp.sum(e, axis=-1, keepdims=True), approx=True)

    out_h = jnp.einsum('hnm,hmd->hnd', attn.astype(jnp.bfloat16), v,
                       preferred_element_type=jnp.float32)      # (H, N, dh)
    # Output projection per head, summed over heads == concat(heads) @ W_out.T
    proj_h = jnp.einsum('hnd,hdD->hnD', out_h.astype(jnp.bfloat16), wo_ref[0],
                        preferred_element_type=jnp.float32)     # (H, N, Dp)
    x = jnp.sum(proj_h, axis=0) + bo_ref[0] + x                 # residual, f32

    # ---------------- PreNorm feed-forward ----------------
    xn2 = _layernorm_padded(x, ln2g_ref[0], ln2b_ref[0], d_real)
    h = jnp.dot(xn2.astype(jnp.bfloat16), w1_ref[0],
                preferred_element_type=jnp.float32) + b1_ref[0]
    h = _gelu_exact(h)
    y = jnp.dot(h.astype(jnp.bfloat16), w2_ref[0],
                preferred_element_type=jnp.float32) + b2_ref[0]
    x = y + x                                                   # residual, f32

    x_scr[...] = x                                              # carry to next layer

    # ---------------- final Linear (last layer only) ----------------
    @pl.when(d == last)
    def _():
        out = jnp.dot(x.astype(jnp.bfloat16), wf_ref[...],
                      preferred_element_type=jnp.float32) + bf_ref[...]
        o_ref[0] = out.astype(o_ref.dtype)


# ----------------------------- pallas_call wrapper ---------------------------

def transformer_forward(kp, x):
    """x: (B, N, dim) f32 -> (B, N, dim_out) f32. One pallas_call for the whole network."""
    B, N, dim = x.shape
    Dp, Hp, Op = kp["Dp"], kp["Hp"], kp["Op"]
    depth, heads, dim_head = kp["depth"], kp["heads"], kp["dim_head"]

    xp = jnp.pad(x.astype(jnp.float32), ((0, 0), (0, 0), (0, Dp - dim)))

    def layer_spec(shape):                       # stacked (depth, ...) weight
        n = len(shape)
        return pl.BlockSpec((1,) + tuple(shape[1:]),
                            lambda b, d, _n=n: (d,) + (0,) * (_n - 1))

    def rep_spec(shape):                         # replicated (final linear) weight
        n = len(shape)
        return pl.BlockSpec(tuple(shape), lambda b, d, _n=n: (0,) * _n)

    weight_keys = ("ln1_g", "ln1_b", "wqkv", "wo", "b_out",
                   "ln2_g", "ln2_b", "w1", "b1", "w2", "b2")
    weights = [kp[k] for k in weight_keys]

    in_specs = [pl.BlockSpec((1, N, Dp), lambda b, d: (b, 0, 0))]
    in_specs += [layer_spec(w.shape) for w in weights]
    in_specs += [rep_spec(kp["w_final"].shape), rep_spec(kp["b_final"].shape)]

    kernel = functools.partial(fused_transformer_kernel,
                               d_real=dim, heads=heads, dim_head=dim_head)

    out = pl.pallas_call(
        kernel,
        out_shape=jax.ShapeDtypeStruct((B, N, Op), jnp.float32),
        grid_spec=pltpu.PrefetchScalarGridSpec(
            num_scalar_prefetch=0,
            grid=(B, depth),
            in_specs=in_specs,
            out_specs=pl.BlockSpec((1, N, Op), lambda b, d: (b, 0, 0)),
            scratch_shapes=[pltpu.VMEM((N, Dp), jnp.float32)],
        ),
        compiler_params=pltpu.CompilerParams(
            dimension_semantics=("parallel", "arbitrary"),   # batch // v7x TCs, depth serial
            vmem_limit_bytes=32 * 1024 * 1024,
        ),
    )(xp, *weights, kp["w_final"], kp["b_final"])
    return out[:, :, :kp["dim_out"]]


# ----------------------------- parameter init (PyTorch layout) -----------------

def _kaiming_normal(key, out_f, in_f):
    # nn.init.kaiming_normal_ default: fan_in, gain=sqrt(2); weight shape (out, in)
    std = math.sqrt(2.0 / in_f)
    return std * jax.random.normal(key, (out_f, in_f), dtype=jnp.float32)


def init_raw_params(key, dim, depth, heads, dim_head, mlp_dim, dim_out):
    inner = heads * dim_head
    layers = []
    for _ in range(depth):
        key, k1, k2, k3, k4 = jax.random.split(key, 5)
        layers.append(dict(
            ln1_g=jnp.ones((dim,), jnp.float32), ln1_b=jnp.zeros((dim,), jnp.float32),
            w_qkv=_kaiming_normal(k1, 3 * inner, dim),                 # (3*inner, dim)
            w_out=_kaiming_normal(k2, dim, inner),                     # (dim, inner)
            b_out=jnp.full((dim,), 0.01, jnp.float32),
            ln2_g=jnp.ones((dim,), jnp.float32), ln2_b=jnp.zeros((dim,), jnp.float32),
            w1=_kaiming_normal(k3, mlp_dim, dim), b1=jnp.full((mlp_dim,), 0.01, jnp.float32),
            w2=_kaiming_normal(k4, dim, mlp_dim), b2=jnp.full((dim,), 0.01, jnp.float32),
        ))
    key, kf, kb = jax.random.split(key, 3)
    bound = 1.0 / math.sqrt(dim)                                       # nn.Linear default init
    w_final = jax.random.uniform(kf, (dim_out, dim), jnp.float32, -bound, bound)
    b_final = jax.random.uniform(kb, (dim_out,), jnp.float32, -bound, bound)
    return dict(layers=layers, w_final=w_final, b_final=b_final)


def prepare_kernel_params(raw, dim, depth, heads, dim_head, mlp_dim, dim_out):
    """Pad feature dims to 128 lanes, pre-transpose to (in,out), combine Q/K/V per head
    (with the attention scale folded into Q), stack all per-layer weights along depth,
    cast matmul weights to bf16."""
    Dp = _round_up(dim, LANE)
    Hp = _round_up(mlp_dim, LANE)
    Op = _round_up(dim_out, LANE)
    inner = heads * dim_head
    scale = dim_head ** (-0.5)

    def pad_vec(v, n):
        return jnp.pad(v, (0, n - v.shape[0])).reshape(1, n).astype(jnp.float32)

    keys = ("ln1_g", "ln1_b", "wqkv", "wo", "b_out",
            "ln2_g", "ln2_b", "w1", "b1", "w2", "b2")
    per = {k: [] for k in keys}

    for r in raw["layers"]:
        wq = r["w_qkv"][0 * inner:1 * inner].reshape(heads, dim_head, dim) * scale
        wk = r["w_qkv"][1 * inner:2 * inner].reshape(heads, dim_head, dim)
        wv = r["w_qkv"][2 * inner:3 * inner].reshape(heads, dim_head, dim)
        wqkv = jnp.concatenate([wq, wk, wv], axis=1)            # (H, 3*dh, dim)
        wqkv = jnp.transpose(wqkv, (0, 2, 1))                   # (H, dim, 3*dh)
        wqkv = jnp.pad(wqkv, ((0, 0), (0, Dp - dim), (0, 0))).astype(jnp.bfloat16)

        # w_out (dim, inner) -> per-head (H, dh, Dp) so sum_h (out_h @ wo_h) == concat @ W_out.T
        wo = r["w_out"].reshape(dim, heads, dim_head).transpose(1, 2, 0)   # (H, dh, dim)
        wo = jnp.pad(wo, ((0, 0), (0, 0), (0, Dp - dim))).astype(jnp.bfloat16)

        per["ln1_g"].append(pad_vec(r["ln1_g"], Dp))
        per["ln1_b"].append(pad_vec(r["ln1_b"], Dp))
        per["wqkv"].append(wqkv)
        per["wo"].append(wo)
        per["b_out"].append(pad_vec(r["b_out"], Dp))
        per["ln2_g"].append(pad_vec(r["ln2_g"], Dp))
        per["ln2_b"].append(pad_vec(r["ln2_b"], Dp))
        per["w1"].append(jnp.pad(r["w1"].T, ((0, Dp - dim), (0, Hp - mlp_dim))).astype(jnp.bfloat16))
        per["b1"].append(pad_vec(r["b1"], Hp))
        per["w2"].append(jnp.pad(r["w2"].T, ((0, Hp - mlp_dim), (0, Dp - dim))).astype(jnp.bfloat16))
        per["b2"].append(pad_vec(r["b2"], Dp))

    kp = {k: jnp.stack(v, axis=0) for k, v in per.items()}      # leading depth axis
    kp["w_final"] = jnp.pad(raw["w_final"].T, ((0, Dp - dim), (0, Op - dim_out))).astype(jnp.bfloat16)
    kp["b_final"] = pad_vec(raw["b_final"], Op)
    kp.update(Dp=Dp, Hp=Hp, Op=Op, dim=dim, dim_out=dim_out,
              depth=depth, heads=heads, dim_head=dim_head)
    return kp


# ----------------------------- pure-JAX reference -------------------------------

def reference_forward(raw, x, *, heads, dim_head):
    def ln(v, g, b):
        m = jnp.mean(v, -1, keepdims=True)
        var = jnp.mean((v - m) ** 2, -1, keepdims=True)
        return (v - m) * lax.rsqrt(var + 1e-5) * g + b

    inner = heads * dim_head
    scale = dim_head ** (-0.5)
    for lyr in raw["layers"]:
        xn = ln(x, lyr["ln1_g"], lyr["ln1_b"])
        qkv = xn @ lyr["w_qkv"].T
        q, k, v = jnp.split(qkv, 3, axis=-1)
        B, N, _ = q.shape
        sh = lambda t: t.reshape(B, N, heads, dim_head).transpose(0, 2, 1, 3)
        qh, kh, vh = sh(q), sh(k), sh(v)
        dots = jnp.einsum('bhnd,bhmd->bhnm', qh, kh) * scale
        attn = jax.nn.softmax(dots, axis=-1)
        out = jnp.einsum('bhnm,bhmd->bhnd', attn, vh)
        out = out.transpose(0, 2, 1, 3).reshape(B, N, inner)
        x = out @ lyr["w_out"].T + lyr["b_out"] + x

        xn = ln(x, lyr["ln2_g"], lyr["ln2_b"])
        h = xn @ lyr["w1"].T + lyr["b1"]
        h = 0.5 * h * (1.0 + lax.erf(h / math.sqrt(2.0)))
        x = h @ lyr["w2"].T + lyr["b2"] + x
    return x @ raw["w_final"].T + raw["b_final"]


# ----------------------------- main ---------------------------------------------

if __name__ == "__main__":
    B, N = 2, 8
    dim, depth, heads, dim_head, mlp_dim, dim_out = 32, 2, 4, 8, 64, 16

    key = jax.random.PRNGKey(0)
    key, kx, kp_key = jax.random.split(key, 3)
    x = jax.random.normal(kx, (B, N, dim), dtype=jnp.float32)

    raw = init_raw_params(kp_key, dim, depth, heads, dim_head, mlp_dim, dim_out)
    kparams = prepare_kernel_params(raw, dim, depth, heads, dim_head, mlp_dim, dim_out)

    out = transformer_forward(kparams, x)
    out = jax.block_until_ready(out)

    ref = reference_forward(raw, x, heads=heads, dim_head=dim_head)
    assert out.shape == (B, N, dim_out)
    # bf16 MXU operands (f32 accumulation) + approx reciprocal -> loosened tolerance.
    assert jnp.allclose(out, ref, atol=5e-2, rtol=5e-2), "mismatch vs reference"

    print("KERNEL_OK")
</pallas_src>

<mosaic_0001>
module attributes {stable_mosaic.version = 11 : i64} {
  func.func @fused_transformer_kernel(%arg0: i32, %arg1: i32, %arg2: memref<1x8x128xf32, #tpu.memory_space<vmem>>, %arg3: memref<1x1x128xf32, #tpu.memory_space<vmem>>, %arg4: memref<1x1x128xf32, #tpu.memory_space<vmem>>, %arg5: memref<1x4x128x24xbf16, #tpu.memory_space<vmem>>, %arg6: memref<1x4x8x128xbf16, #tpu.memory_space<vmem>>, %arg7: memref<1x1x128xf32, #tpu.memory_space<vmem>>, %arg8: memref<1x1x128xf32, #tpu.memory_space<vmem>>, %arg9: memref<1x1x128xf32, #tpu.memory_space<vmem>>, %arg10: memref<1x128x128xbf16, #tpu.memory_space<vmem>>, %arg11: memref<1x1x128xf32, #tpu.memory_space<vmem>>, %arg12: memref<1x128x128xbf16, #tpu.memory_space<vmem>>, %arg13: memref<1x1x128xf32, #tpu.memory_space<vmem>>, %arg14: memref<128x128xbf16, #tpu.memory_space<vmem>>, %arg15: memref<1x128xf32, #tpu.memory_space<vmem>>, %arg16: memref<1x8x128xf32, #tpu.memory_space<vmem>>, %arg17: memref<8x128xf32, #tpu.memory_space<vmem>>) attributes {dimension_semantics = [#tpu.dimension_semantics<parallel>, #tpu.dimension_semantics<arbitrary>], iteration_bounds = array<i64: 2, 2>, scalar_prefetch = 0 : i64, scratch_operands = 1 : i64, tpu.core_type = #tpu.core_type<tc>, window_params = [{transform_indices = @transform_0, window_bounds = array<i64: 1, 8, 128>}, {transform_indices = @transform_1, window_bounds = array<i64: 1, 1, 128>}, {transform_indices = @transform_2, window_bounds = array<i64: 1, 1, 128>}, {transform_indices = @transform_3, window_bounds = array<i64: 1, 4, 128, 24>}, {transform_indices = @transform_4, window_bounds = array<i64: 1, 4, 8, 128>}, {transform_indices = @transform_5, window_bounds = array<i64: 1, 1, 128>}, {transform_indices = @transform_6, window_bounds = array<i64: 1, 1, 128>}, {transform_indices = @transform_7, window_bounds = array<i64: 1, 1, 128>}, {transform_indices = @transform_8, window_bounds = array<i64: 1, 128, 128>}, {transform_indices = @transform_9, window_bounds = array<i64: 1, 1, 128>}, {transform_indices = @transform_10, window_bounds = array<i64: 1, 128, 128>}, {transform_indices = @transform_11, window_bounds = array<i64: 1, 1, 128>}, {pipeline_mode = #tpu.pipeline_mode<synchronous>, transform_indices = @transform_12, window_bounds = array<i64: 128, 128>}, {pipeline_mode = #tpu.pipeline_mode<synchronous>, transform_indices = @transform_13, window_bounds = array<i64: 1, 128>}, {transform_indices = @transform_14, window_bounds = array<i64: 1, 8, 128>}]} {
    %c0_i32 = arith.constant 0 : i32
    %0 = arith.cmpi eq, %arg1, %c0_i32 : i32
    %1 = arith.extui %0 : i1 to i32
    %c0_i32_0 = arith.constant 0 : i32
    %2 = arith.cmpi ne, %1, %c0_i32_0 : i32
    scf.if %2 {
      %c0_64 = arith.constant 0 : index
      %c0_65 = arith.constant 0 : index
      %c0_66 = arith.constant 0 : index
      %125 = vector.load %arg2[%c0_64, %c0_65, %c0_66] : memref<1x8x128xf32, #tpu.memory_space<vmem>>, vector<1x8x128xf32>
      %126 = vector.shape_cast %125 : vector<1x8x128xf32> to vector<8x128xf32>
      %c0_67 = arith.constant 0 : index
      %c0_68 = arith.constant 0 : index
      %127 = vector.load %arg17[%c0_67, %c0_68] : memref<8x128xf32, #tpu.memory_space<vmem>>, vector<8x128xf32>
      tpu.vector_store %arg17[%c0_67, %c0_68], %126 {strides = array<i32>} : memref<8x128xf32, #tpu.memory_space<vmem>>, vector<8x128xf32>,
    } else {
    }
    %c0 = arith.constant 0 : index
    %c0_1 = arith.constant 0 : index
    %3 = vector.load %arg17[%c0, %c0_1] : memref<8x128xf32, #tpu.memory_space<vmem>>, vector<8x128xf32>
    %c0_2 = arith.constant 0 : index
    %c0_3 = arith.constant 0 : index
    %c0_4 = arith.constant 0 : index
    %4 = vector.load %arg3[%c0_2, %c0_3, %c0_4] : memref<1x1x128xf32, #tpu.memory_space<vmem>>, vector<1x1x128xf32>
    %5 = vector.shape_cast %4 : vector<1x1x128xf32> to vector<1x128xf32>
    %c0_5 = arith.constant 0 : index
    %c0_6 = arith.constant 0 : index
    %c0_7 = arith.constant 0 : index
    %6 = vector.load %arg4[%c0_5, %c0_6, %c0_7] : memref<1x1x128xf32, #tpu.memory_space<vmem>>, vector<1x1x128xf32>
    %7 = vector.shape_cast %6 : vector<1x1x128xf32> to vector<1x128xf32>
    %cst = arith.constant dense<0.000000e+00> : vector<8xf32>
    %8 = vector.multi_reduction <add>, %3, %cst [1] : vector<8x128xf32> to vector<8xf32>
    %9 = vector.shape_cast %8 : vector<8xf32> to vector<8x1xf32>
    %cst_8 = arith.constant 3.125000e-02 : f32
    %10 = vector.broadcast %cst_8 : f32 to vector<8x1xf32>
    %11 = arith.mulf %9, %10 : vector<8x1xf32>
    %12 = tpu.iota {dimensions = array<i32: 1>} : vector<8x128xi32>
    %c32_i32 = arith.constant 32 : i32
    %13 = vector.broadcast %c32_i32 : i32 to vector<8x128xi32>
    %14 = arith.cmpi slt, %12, %13 : vector<8x128xi32>
    %15 = vector.broadcast %11 : vector<8x1xf32> to vector<8x128xf32>
    %16 = arith.subf %3, %15 : vector<8x128xf32>
    %cst_9 = arith.constant 0.000000e+00 : f32
    %17 = vector.broadcast %cst_9 : f32 to vector<8x128xf32>
    %18 = arith.select %14, %16, %17 : vector<8x128xi1>, vector<8x128xf32>
    %19 = arith.mulf %18, %18 : vector<8x128xf32>
    %cst_10 = arith.constant dense<0.000000e+00> : vector<8xf32>
    %20 = vector.multi_reduction <add>, %19, %cst_10 [1] : vector<8x128xf32> to vector<8xf32>
    %21 = vector.shape_cast %20 : vector<8xf32> to vector<8x1xf32>
    %cst_11 = arith.constant 3.125000e-02 : f32
    %22 = vector.broadcast %cst_11 : f32 to vector<8x1xf32>
    %23 = arith.mulf %21, %22 : vector<8x1xf32>
    %cst_12 = arith.constant 9.99999974E-6 : f32
    %24 = vector.broadcast %cst_12 : f32 to vector<8x1xf32>
    %25 = arith.addf %23, %24 : vector<8x1xf32>
    %26 = math.rsqrt %25 : vector<8x1xf32>
    %27 = vector.broadcast %26 : vector<8x1xf32> to vector<8x128xf32>
    %28 = arith.mulf %18, %27 : vector<8x128xf32>
    %29 = vector.broadcast %5 : vector<1x128xf32> to vector<8x128xf32>
    %30 = arith.mulf %28, %29 : vector<8x128xf32>
    %31 = vector.broadcast %7 : vector<1x128xf32> to vector<8x128xf32>
    %32 = arith.addf %30, %31 : vector<8x128xf32>
    %33 = arith.truncf %32 : vector<8x128xf32> to vector<8x128xbf16>
    %34 = vector.shape_cast %33 : vector<8x128xbf16> to vector<1x8x128xbf16>
    %35 = vector.shape_cast %34 : vector<1x8x128xbf16> to vector<1x8x128xbf16>
    %36 = vector.broadcast %35 : vector<1x8x128xbf16> to vector<4x8x128xbf16>
    %c0_13 = arith.constant 0 : index
    %c0_14 = arith.constant 0 : index
    %c0_15 = arith.constant 0 : index
    %c0_16 = arith.constant 0 : index
    %37 = vector.load %arg5[%c0_13, %c0_14, %c0_15, %c0_16] : memref<1x4x128x24xbf16, #tpu.memory_space<vmem>>, vector<1x4x128x24xbf16>
    %38 = vector.shape_cast %37 : vector<1x4x128x24xbf16> to vector<4x128x24xbf16>
    "tpu.trace_start"() <{level = 10 : i32, message = "hnD,hDe->hne"}> : () -> ()
    %cst_17 = arith.constant dense<0.000000e+00> : vector<4x8x24xf32>
    %39 = tpu.matmul %36, %38, %cst_17 {dimension_numbers = #tpu.dot_dimension_numbers<[2], [1], [1], [2], [0, 0, 0, 1, 1, 2], [0], [0]>} : vector<4x8x128xbf16>, vector<4x128x24xbf16>, vector<4x8x24xf32> -> vector<4x8x24xf32>
    "tpu.trace_stop"() : () -> ()
    %40 = arith.truncf %39 : vector<4x8x24xf32> to vector<4x8x24xbf16>
    %41 = vector.extract_strided_slice %40 {offsets = [0, 0, 0], sizes = [4, 8, 8], strides = [1, 1, 1]} : vector<4x8x24xbf16> to vector<4x8x8xbf16>
    %42 = vector.extract_strided_slice %40 {offsets = [0, 0, 8], sizes = [4, 8, 8], strides = [1, 1, 1]} : vector<4x8x24xbf16> to vector<4x8x8xbf16>
    %43 = vector.extract_strided_slice %40 {offsets = [0, 0, 16], sizes = [4, 8, 8], strides = [1, 1, 1]} : vector<4x8x24xbf16> to vector<4x8x8xbf16>
    "tpu.trace_start"() <{level = 10 : i32, message = "hnd,hmd->hnm"}> : () -> ()
    %cst_18 = arith.constant dense<0.000000e+00> : vector<4x8x8xf32>
    %44 = tpu.matmul %41, %42, %cst_18 {dimension_numbers = #tpu.dot_dimension_numbers<[2], [2], [1], [1], [0, 0, 0, 1, 1, 1], [0], [0]>} : vector<4x8x8xbf16>, vector<4x8x8xbf16>, vector<4x8x8xf32> -> vector<4x8x8xf32>
    "tpu.trace_stop"() : () -> ()
    %cst_19 = arith.constant dense<0xFF800000> : vector<4x8xf32>
    %45 = vector.multi_reduction <maximumf>, %44, %cst_19 [2] : vector<4x8x8xf32> to vector<4x8xf32>
    %46 = vector.shape_cast %45 : vector<4x8xf32> to vector<4x8x1xf32>
    %47 = vector.broadcast %46 : vector<4x8x1xf32> to vector<4x8x8xf32>
    %48 = arith.subf %44, %47 : vector<4x8x8xf32>
    %49 = math.exp %48 : vector<4x8x8xf32>
    %cst_20 = arith.constant dense<0.000000e+00> : vector<4x8xf32>
    %50 = vector.multi_reduction <add>, %49, %cst_20 [2] : vector<4x8x8xf32> to vector<4x8xf32>
    %51 = vector.shape_cast %50 : vector<4x8xf32> to vector<4x8x1xf32>
    %52 = tpu.reciprocal %51 {approx = true} : vector<4x8x1xf32> -> vector<4x8x1xf32>
    %53 = vector.broadcast %52 : vector<4x8x1xf32> to vector<4x8x8xf32>
    %54 = arith.mulf %49, %53 : vector<4x8x8xf32>
    %55 = arith.truncf %54 : vector<4x8x8xf32> to vector<4x8x8xbf16>
    "tpu.trace_start"() <{level = 10 : i32, message = "hnm,hmd->hnd"}> : () -> ()
    %cst_21 = arith.constant dense<0.000000e+00> : vector<4x8x8xf32>
    %56 = tpu.matmul %55, %43, %cst_21 {dimension_numbers = #tpu.dot_dimension_numbers<[2], [1], [1], [2], [0, 0, 0, 1, 1, 2], [0], [0]>} : vector<4x8x8xbf16>, vector<4x8x8xbf16>, vector<4x8x8xf32> -> vector<4x8x8xf32>
    "tpu.trace_stop"() : () -> ()
    %57 = arith.truncf %56 : vector<4x8x8xf32> to vector<4x8x8xbf16>
    %c0_22 = arith.constant 0 : index
    %c0_23 = arith.constant 0 : index
    %c0_24 = arith.constant 0 : index
    %c0_25 = arith.constant 0 : index
    %58 = vector.load %arg6[%c0_22, %c0_23, %c0_24, %c0_25] : memref<1x4x8x128xbf16, #tpu.memory_space<vmem>>, vector<1x4x8x128xbf16>
    %59 = vector.shape_cast %58 : vector<1x4x8x128xbf16> to vector<4x8x128xbf16>
    "tpu.trace_start"() <{level = 10 : i32, message = "hnd,hdD->hnD"}> : () -> ()
    %cst_26 = arith.constant dense<0.000000e+00> : vector<4x8x128xf32>
    %60 = tpu.matmul %57, %59, %cst_26 {dimension_numbers = #tpu.dot_dimension_numbers<[2], [1], [1], [2], [0, 0, 0, 1, 1, 2], [0], [0]>} : vector<4x8x8xbf16>, vector<4x8x128xbf16>, vector<4x8x128xf32> -> vector<4x8x128xf32>
    "tpu.trace_stop"() : () -> ()
    %cst_27 = arith.constant dense<0.000000e+00> : vector<8x128xf32>
    %61 = vector.multi_reduction <add>, %60, %cst_27 [0] : vector<4x8x128xf32> to vector<8x128xf32>
    %c0_28 = arith.constant 0 : index
    %c0_29 = arith.constant 0 : index
    %c0_30 = arith.constant 0 : index
    %62 = vector.load %arg7[%c0_28, %c0_29, %c0_30] : memref<1x1x128xf32, #tpu.memory_space<vmem>>, vector<1x1x128xf32>
    %63 = vector.shape_cast %62 : vector<1x1x128xf32> to vector<1x128xf32>
    %64 = vector.broadcast %63 : vector<1x128xf32> to vector<8x128xf32>
    %65 = arith.addf %61, %64 : vector<8x128xf32>
    %66 = arith.addf %65, %3 : vector<8x128xf32>
    %c0_31 = arith.constant 0 : index
    %c0_32 = arith.constant 0 : index
    %c0_33 = arith.constant 0 : index
    %67 = vector.load %arg8[%c0_31, %c0_32, %c0_33] : memref<1x1x128xf32, #tpu.memory_space<vmem>>, vector<1x1x128xf32>
    %68 = vector.shape_cast %67 : vector<1x1x128xf32> to vector<1x128xf32>
    %c0_34 = arith.constant 0 : index
    %c0_35 = arith.constant 0 : index
    %c0_36 = arith.constant 0 : index
    %69 = vector.load %arg9[%c0_34, %c0_35, %c0_36] : memref<1x1x128xf32, #tpu.memory_space<vmem>>, vector<1x1x128xf32>
    %70 = vector.shape_cast %69 : vector<1x1x128xf32> to vector<1x128xf32>
    %cst_37 = arith.constant dense<0.000000e+00> : vector<8xf32>
    %71 = vector.multi_reduction <add>, %66, %cst_37 [1] : vector<8x128xf32> to vector<8xf32>
    %72 = vector.shape_cast %71 : vector<8xf32> to vector<8x1xf32>
    %cst_38 = arith.constant 3.125000e-02 : f32
    %73 = vector.broadcast %cst_38 : f32 to vector<8x1xf32>
    %74 = arith.mulf %72, %73 : vector<8x1xf32>
    %75 = tpu.iota {dimensions = array<i32: 1>} : vector<8x128xi32>
    %c32_i32_39 = arith.constant 32 : i32
    %76 = vector.broadcast %c32_i32_39 : i32 to vector<8x128xi32>
    %77 = arith.cmpi slt, %75, %76 : vector<8x128xi32>
    %78 = vector.broadcast %74 : vector<8x1xf32> to vector<8x128xf32>
    %79 = arith.subf %66, %78 : vector<8x128xf32>
    %cst_40 = arith.constant 0.000000e+00 : f32
    %80 = vector.broadcast %cst_40 : f32 to vector<8x128xf32>
    %81 = arith.select %77, %79, %80 : vector<8x128xi1>, vector<8x128xf32>
    %82 = arith.mulf %81, %81 : vector<8x128xf32>
    %cst_41 = arith.constant dense<0.000000e+00> : vector<8xf32>
    %83 = vector.multi_reduction <add>, %82, %cst_41 [1] : vector<8x128xf32> to vector<8xf32>
    %84 = vector.shape_cast %83 : vector<8xf32> to vector<8x1xf32>
    %cst_42 = arith.constant 3.125000e-02 : f32
    %85 = vector.broadcast %cst_42 : f32 to vector<8x1xf32>
    %86 = arith.mulf %84, %85 : vector<8x1xf32>
    %cst_43 = arith.constant 9.99999974E-6 : f32
    %87 = vector.broadcast %cst_43 : f32 to vector<8x1xf32>
    %88 = arith.addf %86, %87 : vector<8x1xf32>
    %89 = math.rsqrt %88 : vector<8x1xf32>
    %90 = vector.broadcast %89 : vector<8x1xf32> to vector<8x128xf32>
    %91 = arith.mulf %81, %90 : vector<8x128xf32>
    %92 = vector.broadcast %68 : vector<1x128xf32> to vector<8x128xf32>
    %93 = arith.mulf %91, %92 : vector<8x128xf32>
    %94 = vector.broadcast %70 : vector<1x128xf32> to vector<8x128xf32>
    %95 = arith.addf %93, %94 : vector<8x128xf32>
    %96 = arith.truncf %95 : vector<8x128xf32> to vector<8x128xbf16>
    %c0_44 = arith.constant 0 : index
    %c0_45 = arith.constant 0 : index
    %c0_46 = arith.constant 0 : index
    %97 = vector.load %arg10[%c0_44, %c0_45, %c0_46] : memref<1x128x128xbf16, #tpu.memory_space<vmem>>, vector<1x128x128xbf16>
    %98 = vector.shape_cast %97 : vector<1x128x128xbf16> to vector<128x128xbf16>
    %cst_47 = arith.constant dense<0.000000e+00> : vector<8x128xf32>
    %99 = tpu.matmul %96, %98, %cst_47 {dimension_numbers = #tpu.dot_dimension_numbers<[1], [0], [0], [1], [0, 0, 1, 1], [], []>} : vector<8x128xbf16>, vector<128x128xbf16>, vector<8x128xf32> -> vector<8x128xf32>
    %c0_48 = arith.constant 0 : index
    %c0_49 = arith.constant 0 : index
    %c0_50 = arith.constant 0 : index
    %100 = vector.load %arg11[%c0_48, %c0_49, %c0_50] : memref<1x1x128xf32, #tpu.memory_space<vmem>>, vector<1x1x128xf32>
    %101 = vector.shape_cast %100 : vector<1x1x128xf32> to vector<1x128xf32>
    %102 = vector.broadcast %101 : vector<1x128xf32> to vector<8x128xf32>
    %103 = arith.addf %99, %102 : vector<8x128xf32>
    %cst_51 = arith.constant 5.000000e-01 : f32
    %104 = vector.broadcast %cst_51 : f32 to vector<8x128xf32>
    %105 = arith.mulf %104, %103 : vector<8x128xf32>
    %cst_52 = arith.constant 0.707106769 : f32
    %106 = vector.broadcast %cst_52 : f32 to vector<8x128xf32>
    %107 = arith.mulf %103, %106 : vector<8x128xf32>
    %108 = math.erf %107 : vector<8x128xf32>
    %cst_53 = arith.constant 1.000000e+00 : f32
    %109 = vector.broadcast %cst_53 : f32 to vector<8x128xf32>
    %110 = arith.addf %109, %108 : vector<8x128xf32>
    %111 = arith.mulf %105, %110 : vector<8x128xf32>
    %112 = arith.truncf %111 : vector<8x128xf32> to vector<8x128xbf16>
    %c0_54 = arith.constant 0 : index
    %c0_55 = arith.constant 0 : index
    %c0_56 = arith.constant 0 : index
    %113 = vector.load %arg12[%c0_54, %c0_55, %c0_56] : memref<1x128x128xbf16, #tpu.memory_space<vmem>>, vector<1x128x128xbf16>
    %114 = vector.shape_cast %113 : vector<1x128x128xbf16> to vector<128x128xbf16>
    %cst_57 = arith.constant dense<0.000000e+00> : vector<8x128xf32>
    %115 = tpu.matmul %112, %114, %cst_57 {dimension_numbers = #tpu.dot_dimension_numbers<[1], [0], [0], [1], [0, 0, 1, 1], [], []>} : vector<8x128xbf16>, vector<128x128xbf16>, vector<8x128xf32> -> vector<8x128xf32>
    %c0_58 = arith.constant 0 : index
    %c0_59 = arith.constant 0 : index
    %c0_60 = arith.constant 0 : index
    %116 = vector.load %arg13[%c0_58, %c0_59, %c0_60] : memref<1x1x128xf32, #tpu.memory_space<vmem>>, vector<1x1x128xf32>
    %117 = vector.shape_cast %116 : vector<1x1x128xf32> to vector<1x128xf32>
    %118 = vector.broadcast %117 : vector<1x128xf32> to vector<8x128xf32>
    %119 = arith.addf %115, %118 : vector<8x128xf32>
    %120 = arith.addf %119, %66 : vector<8x128xf32>
    %c0_61 = arith.constant 0 : index
    %c0_62 = arith.constant 0 : index
    %121 = vector.load %arg17[%c0_61, %c0_62] : memref<8x128xf32, #tpu.memory_space<vmem>>, vector<8x128xf32>
    tpu.vector_store %arg17[%c0_61, %c0_62], %120 {strides = array<i32>} : memref<8x128xf32, #tpu.memory_space<vmem>>, vector<8x128xf32>,
    %c1_i32 = arith.constant 1 : i32
    %122 = arith.cmpi eq, %arg1, %c1_i32 : i32
    %123 = arith.extui %122 : i1 to i32
    %c0_i32_63 = arith.constant 0 : i32
    %124 = arith.cmpi ne, %123, %c0_i32_63 : i32
    scf.if %124 {
      %125 = arith.truncf %120 : vector<8x128xf32> to vector<8x128xbf16>
      %c0_64 = arith.constant 0 : index
      %c0_65 = arith.constant 0 : index
      %126 = vector.load %arg14[%c0_64, %c0_65] : memref<128x128xbf16, #tpu.memory_space<vmem>>, vector<128x128xbf16>
      %cst_66 = arith.constant dense<0.000000e+00> : vector<8x128xf32>
      %127 = tpu.matmul %125, %126, %cst_66 {dimension_numbers = #tpu.dot_dimension_numbers<[1], [0], [0], [1], [0, 0, 1, 1], [], []>} : vector<8x128xbf16>, vector<128x128xbf16>, vector<8x128xf32> -> vector<8x128xf32>
      %c0_67 = arith.constant 0 : index
      %c0_68 = arith.constant 0 : index
      %128 = vector.load %arg15[%c0_67, %c0_68] : memref<1x128xf32, #tpu.memory_space<vmem>>, vector<1x128xf32>
      %129 = vector.broadcast %128 : vector<1x128xf32> to vector<8x128xf32>
      %130 = arith.addf %127, %129 : vector<8x128xf32>
      %c0_69 = arith.constant 0 : index
      %c0_70 = arith.constant 0 : index
      %c0_71 = arith.constant 0 : index
      %131 = vector.load %arg16[%c0_69, %c0_70, %c0_71] : memref<1x8x128xf32, #tpu.memory_space<vmem>>, vector<1x8x128xf32>
      %132 = vector.shape_cast %131 : vector<1x8x128xf32> to vector<8x128xf32>
      %133 = vector.shape_cast %130 : vector<8x128xf32> to vector<1x8x128xf32>
      tpu.vector_store %arg16[%c0_69, %c0_70, %c0_71], %133 {strides = array<i32>} : memref<1x8x128xf32, #tpu.memory_space<vmem>>, vector<1x8x128xf32>,
    } else {
    }
    return
  }
  func.func @transform_0(%arg0: i32, %arg1: i32) -> (i32, i32, i32) {
    %c0_i32 = arith.constant 0 : i32
    %c0_i32_0 = arith.constant 0 : i32
    %c0_i32_1 = arith.constant 0 : i32
    return %arg0, %c0_i32, %c0_i32_0 : i32, i32, i32
  }
  func.func @transform_1(%arg0: i32, %arg1: i32) -> (i32, i32, i32) {
    %c0_i32 = arith.constant 0 : i32
    %c0_i32_0 = arith.constant 0 : i32
    %c0_i32_1 = arith.constant 0 : i32
    return %arg1, %c0_i32, %c0_i32_0 : i32, i32, i32
  }
  func.func @transform_2(%arg0: i32, %arg1: i32) -> (i32, i32, i32) {
    %c0_i32 = arith.constant 0 : i32
    %c0_i32_0 = arith.constant 0 : i32
    %c0_i32_1 = arith.constant 0 : i32
    return %arg1, %c0_i32, %c0_i32_0 : i32, i32, i32
  }
  func.func @transform_3(%arg0: i32, %arg1: i32) -> (i32, i32, i32, i32) {
    %c0_i32 = arith.constant 0 : i32
    %c0_i32_0 = arith.constant 0 : i32
    %c0_i32_1 = arith.constant 0 : i32
    %c0_i32_2 = arith.constant 0 : i32
    return %arg1, %c0_i32, %c0_i32_0, %c0_i32_1 : i32, i32, i32, i32
  }
  func.func @transform_4(%arg0: i32, %arg1: i32) -> (i32, i32, i32, i32) {
    %c0_i32 = arith.constant 0 : i32
    %c0_i32_0 = arith.constant 0 : i32
    %c0_i32_1 = arith.constant 0 : i32
    %c0_i32_2 = arith.constant 0 : i32
    return %arg1, %c0_i32, %c0_i32_0, %c0_i32_1 : i32, i32, i32, i32
  }
  func.func @transform_5(%arg0: i32, %arg1: i32) -> (i32, i32, i32) {
    %c0_i32 = arith.constant 0 : i32
    %c0_i32_0 = arith.constant 0 : i32
    %c0_i32_1 = arith.constant 0 : i32
    return %arg1, %c0_i32, %c0_i32_0 : i32, i32, i32
  }
  func.func @transform_6(%arg0: i32, %arg1: i32) -> (i32, i32, i32) {
    %c0_i32 = arith.constant 0 : i32
    %c0_i32_0 = arith.constant 0 : i32
    %c0_i32_1 = arith.constant 0 : i32
    return %arg1, %c0_i32, %c0_i32_0 : i32, i32, i32
  }
  func.func @transform_7(%arg0: i32, %arg1: i32) -> (i32, i32, i32) {
    %c0_i32 = arith.constant 0 : i32
    %c0_i32_0 = arith.constant 0 : i32
    %c0_i32_1 = arith.constant 0 : i32
    return %arg1, %c0_i32, %c0_i32_0 : i32, i32, i32
  }
  func.func @transform_8(%arg0: i32, %arg1: i32) -> (i32, i32, i32) {
    %c0_i32 = arith.constant 0 : i32
    %c0_i32_0 = arith.constant 0 : i32
    %c0_i32_1 = arith.constant 0 : i32
    return %arg1, %c0_i32, %c0_i32_0 : i32, i32, i32
  }
  func.func @transform_9(%arg0: i32, %arg1: i32) -> (i32, i32, i32) {
    %c0_i32 = arith.constant 0 : i32
    %c0_i32_0 = arith.constant 0 : i32
    %c0_i32_1 = arith.constant 0 : i32
    return %arg1, %c0_i32, %c0_i32_0 : i32, i32, i32
  }
  func.func @transform_10(%arg0: i32, %arg1: i32) -> (i32, i32, i32) {
    %c0_i32 = arith.constant 0 : i32
    %c0_i32_0 = arith.constant 0 : i32
    %c0_i32_1 = arith.constant 0 : i32
    return %arg1, %c0_i32, %c0_i32_0 : i32, i32, i32
  }
  func.func @transform_11(%arg0: i32, %arg1: i32) -> (i32, i32, i32) {
    %c0_i32 = arith.constant 0 : i32
    %c0_i32_0 = arith.constant 0 : i32
    %c0_i32_1 = arith.constant 0 : i32
    return %arg1, %c0_i32, %c0_i32_0 : i32, i32, i32
  }
  func.func @transform_12(%arg0: i32, %arg1: i32) -> (i32, i32) {
    %c0_i32 = arith.constant 0 : i32
    %c0_i32_0 = arith.constant 0 : i32
    %c0_i32_1 = arith.constant 0 : i32
    return %c0_i32, %c0_i32_0 : i32, i32
  }
  func.func @transform_13(%arg0: i32, %arg1: i32) -> (i32, i32) {
    %c0_i32 = arith.constant 0 : i32
    %c0_i32_0 = arith.constant 0 : i32
    %c0_i32_1 = arith.constant 0 : i32
    return %c0_i32, %c0_i32_0 : i32, i32
  }
  func.func @transform_14(%arg0: i32, %arg1: i32) -> (i32, i32, i32) {
    %c0_i32 = arith.constant 0 : i32
    %c0_i32_0 = arith.constant 0 : i32
    %c0_i32_1 = arith.constant 0 : i32
    return %arg0, %c0_i32, %c0_i32_0 : i32, i32, i32
  }
}

</mosaic_0001>

<bundles_post_ra>
// kernel: tpu_custom_call.1
= control target key start
LH: loop header
LB: loop body
LE: loop exit
PB: predicated region body
PF: predicated region fallthrough
CT: control target
= control target key end

     0   :  { %s3531_s0 = inlined_call_operand.vmem [shape: f32[2,8,128], index: 0, kind: input, shape index: {}]   ;;  %s3532_s1 = inlined_call_operand.vmem [shape: f32[2,1,128], index: 1, kind: input, shape index: {}]   ;;  %s3533_s2 = inlined_call_operand.vmem [shape: f32[2,1,128], index: 2, kind: input, shape index: {}]   ;;  %s3534_s3 = inlined_call_operand.vmem [shape: bf16[2,4,128,24], index: 3, kind: input, shape index: {}]   ;;  %s3535_s4 = inlined_call_operand.vmem [shape: bf16[2,4,8,128], index: 4, kind: input, shape index: {}]   ;;  %s3536_s5 = inlined_call_operand.vmem [shape: f32[2,1,128], index: 5, kind: input, shape index: {}]   ;;  %s3537_s6 = inlined_call_operand.vmem [shape: f32[2,1,128], index: 6, kind: input, shape index: {}]   ;;  %s3538_s7 = inlined_call_operand.vmem [shape: f32[2,1,128], index: 7, kind: input, shape index: {}]   ;;  %s3539_s8 = inlined_call_operand.vmem [shape: bf16[2,128,128], index: 8, kind: input, shape index: {}]   ;;  %s3540_s9 = inlined_call_operand.vmem [shape: f32[2,1,128], index: 9, kind: input, shape index: {}]   ;;  %s3541_s10 = inlined_call_operand.vmem [shape: bf16[2,128,128], index: 10, kind: input, shape index: {}]   ;;  %s3542_s11 = inlined_call_operand.vmem [shape: f32[2,1,128], index: 11, kind: input, shape index: {}]   ;;  %s3543_s12 = inlined_call_operand.vmem [shape: bf16[128,128], index: 12, kind: input, shape index: {}]   ;;  %s3544_s13 = inlined_call_operand.vmem [shape: f32[1,128], index: 13, kind: input, shape index: {}]   ;;  %s3545_s14 = inlined_call_operand.hbm [shape: f32[2,8,128], index: 14, kind: output, shape index: {}]  }
   0x1   :  { %3562 = sst [smem:[#allocation19_spill]] %s3531_s0 }
   0x2   :  { %3563 = sst [smem:[#allocation20_spill]] %s3534_s3 }
   0x3   :  { %3564 = sst [smem:[#allocation21_spill]] %s3543_s12 }
   0x4   :  { %3565 = sst [smem:[#allocation22_spill]] %s3544_s13 }
   0x5   :  { %3566 = sst [smem:[#allocation23_spill]] %s3545_s14 }
   0x6   :  { %19 = vsyncpa [#allocation4], 0 }
   0x7   :  { %21 = vsyncpa [#allocation4 + $0x1], 0  ;;  %s3059_s29 = smov 0   ;;  %s3061_s30 = smov 0  }
   0x8   :  { %s3063_s15 = smov 0   ;;  %s3065_s16 = smov 0  }
   0x9   :  { %s3067_s17 = smov 0   ;;  %s3069_s18 = smov 0  }
   0xa   :  { %s3071_s19 = smov 0   ;;  %s3073_s20 = smov 0  }
   0xb LB: > { %3567 = sst [smem:[#allocation6_spill]] %s2947_s29  ;;  %s2326_s21 = sadd.s32 4294967295, %s2975_s20   ;;  %s2975_s20 = sphi %s3073_s20, %s27_s20   ;;  %s2971_s19 = sphi %s3071_s19, %s3606_s19   ;;  %s2967_s18 = sphi %s3069_s18, %s3605_s18   ;;  %s2963_s17 = sphi %s3067_s17, %s3604_s17   ;;  %s2959_s16 = sphi %s3065_s16, %s3603_s16   ;;  %s2955_s15 = sphi %s3063_s15, %s3602_s15   ;;  %s2951_s30 = sphi %s3061_s30, %s3601_s30   ;;  %s2947_s29 = sphi %s3059_s29, %s3600_s29  }
   0xc   : > { %3568 = sst [smem:[#allocation7_spill]] %s2951_s30  ;;  %s2327_s22 = sadd.s32 4294967294, %s2975_s20  }
   0xd   : > { %3569 = sst [smem:[#allocation8_spill]] %s2955_s15  ;;  %s36_s23 = sadd.s32 1, %s2967_s18 }
   0xe   : > { %3570 = sst [smem:[#allocation9_spill]] %s2959_s16  ;;  %p37_p0 = scmp.ge.s32.totalorder %s36_s23, 2 }
   0xf   : > { %3571 = sst [smem:[#allocation10_spill]] %s2963_s17  ;;  %s39_s24 = sadd.s32 1, %s2971_s19 }
  0x10   : > { %3572 = sst [smem:[#allocation11_spill]] %s2967_s18  ;;  %p410_p1 = scmp.ne.s32.totalorder %s2955_s15, %s2951_s30 }
  0x11   : > { %3573 = sst [smem:[#allocation12_spill]] %s2971_s19  ;;  %p411_p2 = scmp.eq.s32.totalorder %s2326_s21, 3 }
  0x12   : > { %3574 = sst [smem:[#allocation13_spill]] %s2975_s20  ;;  %s3608_s23 = smov (%p37_p0, %s36_s23), 0 }
  0x13   : > { %3575 = sst [smem:[#allocation14_spill]] %s3608_s23  ;;  %s3610_s24 = smov (!%p37_p0, %s39_s24), %s2971_s19 }
  0x14   : > { %p3108_p3 = por %p411_p2, %p410_p1  ;;  %p416_p4 = scmp.ne.s32.totalorder %s2951_s30, %s2947_s29 }
  0x15   : > { %p41_p5 = scmp.ge.s32.totalorder %s3610_s24, 2  ;;  %p417_p6 = scmp.eq.s32.totalorder %s2327_s22, 3 }
  0x16   : > { %s3576_s25 = scalar_select %p3108_p3, 1, 0 }
  0x17   : > { %p2330_p7 = scmp.ge.s32.totalorder %s2975_s20, 1  ;;  %p522_p8 = scmp.lt.s32.totalorder %s2975_s20, 5 }
  0x18   : > { %3577 = sst [smem:[#allocation15_spill]] %s3576_s25  ;;  %s3612_s24 = smov (%p41_p5, %s3610_s24), 0 }
  0x19   : > { %3578 = sst [smem:[#allocation16_spill]] %s3612_s24  ;;  %p3118_p9 = por %p417_p6, %p416_p4 }
  0x1a   : > { %p523_p10 = pnand %p2330_p7, %p522_p8  ;;  %s397_s27 = ssub.s32 %s2971_s19, %s3612_s24 }
  0x1b   : > { %s3579_s26 = scalar_select %p3118_p9, 1, 0 }
  0x1c   : > { %s400_s28 = sadd.s32 1, %s2955_s15  ;;  %p398_p11 = scmp.eq.s32.totalorder %s397_s27, 0 }
  0x1d   : > { %3580 = sst [smem:[#allocation17_spill]] %s3579_s26  ;;  %526 = sbr.rel (%p523_p10) target bundleno = 2706 (0xa92), region = 76 }
  0x1e   : > { %s3126_s21 = scalar_select %p398_p11, %s2955_s15, %s400_s28  }
  0x1f   : > { %s3549_s22 = sand.u32 (!%p523_p10), 1, %s2951_s30   ;;  %p608_p12 = scmp.lt.s32.totalorder (!%p523_p10), %s2963_s17, 1 }
  0x20   : > { %3581 = sst [smem:[#allocation18_spill]] %s3126_s21  ;;  %s3132_s23 = sshll.u32 (!%p523_p10), %s3549_s22, 3 }
  0x21   : > { %p612_p13 = scmp.lt.s32.totalorder (!%p523_p10), %s2959_s16, 1  ;;  %s3582_s0 = sld [smem:[#allocation19_spill]] (!%p523_p10) }
  0x22   : > { %s3583_s3 = sld [smem:[#allocation20_spill]] (!%p523_p10)  ;;  %s607_s20 = scalar_lea.vmem (!%p523_p10), [#allocation3], %s3132_s23 }
  0x23   : > { %s3584_s30 = sld [smem:[#allocation9_spill]] (!%p523_p10) }
  0x24   : > { %s609_s18 = scalar_select %p608_p12, %s2963_s17, 1 }
  0x25   : > { %s3137_s26 = scalar_select %p612_p13, %s2959_s16, 1 }
  0x26   : > { %s2332_s27 = sshll.u32 %s609_s18, 3 }
  0x27   : > { %s611_s22 = scalar_lea.vmem %s3582_s0, %s2332_s27  ;;  %s2423_s25 = sshll.u32 %s3137_s26, 8 }
  0x28   : > { %s3154_s13 = scalar_lea.vmem %s3583_s3, %s2423_s25  ;;  %s2424_s18 = sshll.u32 %s3137_s26, 4 }
  0x29   : > { %s3160_s24 = scalar_lea.vmem %s3535_s4, %s2424_s18  ;;  %s633_s29 = scalar_lea.vmem %s3537_s6, %s3137_s26 }
  0x2a   : > { %s2425_s17 = sshll.u32 %s3137_s26, 6  ;;  %s644_s3 = scalar_lea.vmem %s3540_s9, %s3137_s26 }
  0x2b   : > { %s3182_s18 = scalar_lea.vmem %s3539_s8, %s2425_s17  ;;  %s3187_s19 = scalar_lea.vmem %s3541_s10, %s2425_s17 }
  0x2c   : > { %s652_s14 = scalar_lea.vmem %s3542_s11, %s3137_s26  ;;  %p2341_p0 = scmp.ne.s32.totalorder %s3584_s30, 0 }
  0x2d   : > { %v658_v0 = vld [vmem:[%s611_s22] sm:$0xff] (!%p2341_p0) }
  0x2e   : > { %657 = sbr.rel (%p2341_p0) target bundleno = 53 (0x35), region = 80  ;;  %659 = vst [vmem:[#allocation2] sm:$0xff] (!%p2341_p0), %v658_v0 }
  0x35 PF: > { %v3195_v1 = vld [vmem:[#allocation2] sm:$0xff]  ;;  %v2977_v4 = vmov 0.0   ;;  %v2805_v5 = vld [vmem:[%s3154_s13 + $0x8] sm:$0xff]   ;;  %v2807_v7 = vld [vmem:[%s3154_s13 + $0x10] sm:$0xff]   ;;  %v666_v9 = vlaneseq  ;;  %vm2978_vm1 = vmmov 0   ;;  %s3585_s30 = scalar_lea.vmem %s3532_s1, %s3137_s26  ;;  %s3586_s12 = scalar_lea.vmem %s3533_s2, %s3137_s26  ;;  %vm1116_vm2 = vcmask 64512  }
  0x36   : > { %663 = vadd.xlane.f32.xlu0 %v3195_v1  ;;  %v2803_v2 = vld [vmem:[%s3154_s13] sm:$0xff]   ;;  %2514 = vmatprep.subr.bf16.mxu0 %v2977_v4  ;;  %v2806_v6 = vld [vmem:[%s3154_s13 + $0x48] sm:$0xff]   ;;  %v2808_v8 = vld [vmem:[%s3154_s13 + $0x50] sm:$0xff]   ;;  %s2980_s16 = smov 112   ;;  %vm1363_vm3 = vcmask 1043456   ;;  %s3587_s28 = scalar_lea.vmem %s3536_s5, %s3137_s26 }
  0x37   : > { %v2804_v3 = vld [vmem:[%s3154_s13 + $0x40] sm:$0xff]   ;;  %2534 = vmatprep.subr.bf16.mxu1 %v2977_v4  ;;  %2515 = vmatpush3.bf16.msra.mxu0 %v2803_v2  ;;  %v3212_v10 = vand.u32 127, %v666_v9  ;;  %v2809_v16 = vld [vmem:[%s3154_s13 + $0x18] sm:$0xff]   ;;  %v2813_v20 = vld [vmem:[%s3154_s13 + $0x28] sm:$0xff]   ;;  %s3588_s22 = scalar_lea.vmem %s3538_s7, %s3137_s26 }
  0x38   : > { %2535 = vmatpush3.bf16.msra.mxu1 %v2804_v3  ;;  %2516 = vmatprep.subr.bf16.mxu0 %v2977_v4  ;;  %v2810_v17 = vld [vmem:[%s3154_s13 + $0x58] sm:$0xff]   ;;  %v2811_v18 = vld [vmem:[%s3154_s13 + $0x20] sm:$0xff]   ;;  %v2814_v21 = vld [vmem:[%s3154_s13 + $0x68] sm:$0xff]  }
  0x39   : > { %2536 = vmatprep.subr.bf16.mxu1 %v2977_v4  ;;  %vm668_vm0 = vcmp.lt.s32.totalorder %v3212_v10, 32  ;;  %v2812_v19 = vld [vmem:[%s3154_s13 + $0x60] sm:$0xff]   ;;  %2530 = vmatprep.mubr.msk.bf16.mxu0 %vm2978_vm1, %v2977_v4  ;;  %v2815_v22 = vld [vmem:[%s3154_s13 + $0x30] sm:$0xff]   ;;  %v2817_v24 = vld [vmem:[%s3154_s13 + $0x38] sm:$0xff]  }
  0x3a   : > { %2550 = vmatprep.mubr.msk.bf16.mxu1 %vm2978_vm1, %v2977_v4  ;;  %v2816_v23 = vld [vmem:[%s3154_s13 + $0x70] sm:$0xff]   ;;  %v2818_v25 = vld [vmem:[%s3154_s13 + $0x78] sm:$0xff]   ;;  %v2342_v30 = vld [vmem:[%s3585_s30] ss:$0 sm:$0xff] }
  0x3b   : > { %2517 = vmatpush3.bf16.msra.mxu0 %v2805_v5  ;;  %v2343_v32 = vld [vmem:[%s3586_s12] ss:$0 sm:$0xff]  ;;  %v2821_v38 = vld [vmem:[%s3154_s13 + $0x88] sm:$0xff]   ;;  %v2823_v40 = vld [vmem:[%s3154_s13 + $0x90] sm:$0xff]  }
  0x3c   : > { %2537 = vmatpush3.bf16.msra.mxu1 %v2806_v6  ;;  %2518 = vmatprep.subr.bf16.mxu0 %v2977_v4  ;;  %v2819_v35 = vld [vmem:[%s3154_s13 + $0x80] sm:$0xff]   ;;  %v2822_v39 = vld [vmem:[%s3154_s13 + $0xc8] sm:$0xff]   ;;  %v2824_v41 = vld [vmem:[%s3154_s13 + $0xd0] sm:$0xff]  }
  0x3d   : > { %2538 = vmatprep.subr.bf16.mxu1 %v2977_v4  ;;  %v2820_v36 = vld [vmem:[%s3154_s13 + $0xc0] sm:$0xff]   ;;  %v2825_v42 = vld [vmem:[%s3154_s13 + $0x98] sm:$0xff]   ;;  %v2829_v46 = vld [vmem:[%s3154_s13 + $0xa8] sm:$0xff]  }
  0x3e   : > { %v2826_v43 = vld [vmem:[%s3154_s13 + $0xd8] sm:$0xff]   ;;  %v2827_v44 = vld [vmem:[%s3154_s13 + $0xa0] sm:$0xff]   ;;  %v2830_v47 = vld [vmem:[%s3154_s13 + $0xe8] sm:$0xff]  }
  0x3f   : > { %2519 = vmatpush3.bf16.msra.mxu0 %v2807_v7  ;;  %v2828_v45 = vld [vmem:[%s3154_s13 + $0xe0] sm:$0xff]   ;;  %v2831_v48 = vld [vmem:[%s3154_s13 + $0xb0] sm:$0xff]   ;;  %v2833_v50 = vld [vmem:[%s3154_s13 + $0xb8] sm:$0xff]  }
  0x40   : > { %2539 = vmatpush3.bf16.msra.mxu1 %v2808_v8  ;;  %2520 = vmatprep.subr.bf16.mxu0 %v2977_v4  ;;  %v2832_v49 = vld [vmem:[%s3154_s13 + $0xf0] sm:$0xff]   ;;  %v2834_v51 = vld [vmem:[%s3154_s13 + $0xf8] sm:$0xff]   ;;  %s2979_s13 = smov 120   ;;  %v2840_v10 = vld [vmem:[%s3182_s18 + $0x28] sm:$0xff]  }
  0x41   : > { %2540 = vmatprep.subr.bf16.mxu1 %v2977_v4 }
  0x43   : > { %2521 = vmatpush3.bf16.msra.mxu0 %v2809_v16 }
  0x44   : > { %2541 = vmatpush3.bf16.msra.mxu1 %v2810_v17  ;;  %2522 = vmatprep.subr.bf16.mxu0 %v2977_v4 }
  0x45   : > { %2542 = vmatprep.subr.bf16.mxu1 %v2977_v4 }
  0x47   : > { %2523 = vmatpush3.bf16.msra.mxu0 %v2811_v18 }
  0x48   : > { %2543 = vmatpush3.bf16.msra.mxu1 %v2812_v19  ;;  %2524 = vmatprep.subr.bf16.mxu0 %v2977_v4 }
  0x49   : > { %2544 = vmatprep.subr.bf16.mxu1 %v2977_v4 }
  0x4b   : > { %2525 = vmatpush3.bf16.msra.mxu0 %v2813_v20 }
  0x4c   : > { %2545 = vmatpush3.bf16.msra.mxu1 %v2814_v21  ;;  %2526 = vmatprep.subr.bf16.mxu0 %v2977_v4 }
  0x4d   : > { %2546 = vmatprep.subr.bf16.mxu1 %v2977_v4 }
  0x4f   : > { %2527 = vmatpush3.bf16.msra.mxu0 %v2815_v22 }
  0x50   : > { %2547 = vmatpush3.bf16.msra.mxu1 %v2816_v23  ;;  %2528 = vmatprep.subr.bf16.mxu0 %v2977_v4 }
  0x51   : > { %2548 = vmatprep.subr.bf16.mxu1 %v2977_v4 }
  0x53   : > { %2529 = vmatpush3.bf16.msra.mxu0 %v2817_v24 }
  0x54   : > { %2549 = vmatpush3.bf16.msra.mxu1 %v2818_v25  ;;  %2554 = vmatprep.subr.bf16.mxu0 %v2977_v4 }
  0x55   : > { %2574 = vmatprep.subr.bf16.mxu1 %v2977_v4 }
  0xc3   : > { %v664_v11 = vpop.xlane.xlu0 %663 }
  0xc4   : > { %v665_v12 = vmul.f32 0.03125, %v664_v11 }
  0xc6   : > { %v669_v13 = vsub.f32 %v3195_v1, %v665_v12 }
  0xc8   : > { %v670_v14 = vsel %vm668_vm0, %v669_v13, 0.0 }
  0xc9   : > { %v671_v15 = vmul.f32 %v670_v14, %v670_v14 }
  0xcb   : > { %672 = vadd.xlane.f32.xlu0 %v671_v15 }
 0x158   : > { %v673_v26 = vpop.xlane.xlu0 %672 }
 0x159   : > { %v674_v27 = vmul.f32 0.03125, %v673_v26 }
 0x15b   : > { %v675_v28 = vadd.f32 1e-05, %v674_v27 }
 0x15d   : > { %2851 = vrsqrt.f32 %v675_v28 }
 0x167   : > { %v2852_v29 = vpop.eup %2851 }
 0x168   : > { %v677_v31 = vmul.f32 %v2852_v29, %v670_v14 }
 0x16a   : > { %v684_v33 = vmul.f32 %v2342_v30, %v677_v31 }
 0x16c   : > { %v691_v34 = vadd.f32 %v2343_v32, %v684_v33 }
 0x16e   : > { %v692_v37 = vpack.c.bf16 %v691_v34, %v691_v34 }
 0x170   : > { %2531 = vmatmul.mubr.bf16.vlgmr.msra.gmra.mrb[0].mxu0 %v692_v37  ;;  %2551 = vmatmul.mubr.bf16.vlgmr.msra.gmra.mrb[0].mxu1 %v692_v37 }
 0x171   : > { %2555 = vmatpush3.bf16.msra.mxu0 %v2819_v35  ;;  %2575 = vmatpush3.bf16.msra.mxu1 %v2820_v36 }
 0x172   : > { %2556 = vmatprep.subr.bf16.mxu0 %v2977_v4  ;;  %2576 = vmatprep.subr.bf16.mxu1 %v2977_v4 }
 0x173   : > { %2570 = vmatprep.mubr.msk.bf16.mxu0 %vm2978_vm1, %v2977_v4  ;;  %2590 = vmatprep.mubr.msk.bf16.mxu1 %vm2978_vm1, %v2977_v4 }
 0x175   : > { %2557 = vmatpush3.bf16.msra.mxu0 %v2821_v38  ;;  %2577 = vmatpush3.bf16.msra.mxu1 %v2822_v39 }
 0x176   : > { %2558 = vmatprep.subr.bf16.mxu0 %v2977_v4  ;;  %2578 = vmatprep.subr.bf16.mxu1 %v2977_v4 }
 0x179   : > { %2559 = vmatpush3.bf16.msra.mxu0 %v2823_v40  ;;  %2579 = vmatpush3.bf16.msra.mxu1 %v2824_v41 }
 0x17a   : > { %2560 = vmatprep.subr.bf16.mxu0 %v2977_v4  ;;  %2580 = vmatprep.subr.bf16.mxu1 %v2977_v4 }
 0x17d   : > { %2561 = vmatpush3.bf16.msra.mxu0 %v2825_v42  ;;  %2581 = vmatpush3.bf16.msra.mxu1 %v2826_v43 }
 0x17e   : > { %2562 = vmatprep.subr.bf16.mxu0 %v2977_v4  ;;  %2582 = vmatprep.subr.bf16.mxu1 %v2977_v4 }
 0x181   : > { %2563 = vmatpush3.bf16.msra.mxu0 %v2827_v44  ;;  %2583 = vmatpush3.bf16.msra.mxu1 %v2828_v45 }
 0x182   : > { %2564 = vmatprep.subr.bf16.mxu0 %v2977_v4  ;;  %2584 = vmatprep.subr.bf16.mxu1 %v2977_v4 }
 0x185   : > { %2565 = vmatpush3.bf16.msra.mxu0 %v2829_v46  ;;  %2585 = vmatpush3.bf16.msra.mxu1 %v2830_v47 }
 0x186   : > { %2566 = vmatprep.subr.bf16.mxu0 %v2977_v4  ;;  %2586 = vmatprep.subr.bf16.mxu1 %v2977_v4 }
 0x189   : > { %2567 = vmatpush3.bf16.msra.mxu0 %v2831_v48  ;;  %2587 = vmatpush3.bf16.msra.mxu1 %v2832_v49 }
 0x18a   : > { %2568 = vmatprep.subr.bf16.mxu0 %v2977_v4  ;;  %2588 = vmatprep.subr.bf16.mxu1 %v2977_v4 }
 0x18d   : > { %2569 = vmatpush3.bf16.msra.mxu0 %v2833_v50  ;;  %2589 = vmatpush3.bf16.msra.mxu1 %v2834_v51 }
 0x18e   : > { %2594 = vmatprep.subr.bf16.mxu0 %v2977_v4  ;;  %2600 = vmatprep.subr.bf16.mxu1 %v2977_v4 }
 0x190   : > { %2571 = vmatmul.mubr.bf16.vlgmr.msra.gmra.mrb[4].mxu0 %v692_v37  ;;  %2591 = vmatmul.mubr.bf16.vlgmr.msra.gmra.mrb[4].mxu1 %v692_v37 }
 0x191   : > { %2596 = vmatprep.mubr.msk.bf16.mxu0 %vm2978_vm1, %v2977_v4  ;;  %2602 = vmatprep.mubr.msk.bf16.mxu1 %vm2978_vm1, %v2977_v4 }
 0x243   : > { %v839_v52 = vpop.f32.mrb[0].mxu0  ;;  %v927_v53 = vpop.f32.mrb[0].mxu1 }
 0x244   : > { %v1109_v54 = vpack.c.bf16 %v839_v52, %v839_v52  ;;  %v2532_v55 = vpop.f32.mrb[1].mxu0  ;;  %v2552_v56 = vpop.f32.mrb[1].mxu1  ;;  %v3292_v61 = vpack.c.bf16 %v927_v53, %v927_v53 }
 0x245   : > { %v842_v57 = vpop.f32.mrb[2].mxu0  ;;  %v930_v58 = vpop.f32.mrb[2].mxu1 }
 0x246   : > { %v2553_v59 = vpop.f32.mrb[3].mxu1  ;;  %1114 = vrot.lane.b32.xlu1 %v1109_v54, %s2979_s13  ;;  %v2533_v60 = vpop.f32.mrb[3].mxu0 }
 0x24a   : > { %1164 = vrot.lane.b32.xlu1 %v3292_v61, %s2979_s13 }
 0x263   : > { %v1015_v62 = vpop.f32.mrb[4].mxu0  ;;  %v1103_v63 = vpop.f32.mrb[4].mxu1 }
 0x264   : > { %v3295_v0 = vpack.c.bf16 %v1015_v62, %v1015_v62  ;;  %v3297_v2 = vpack.c.bf16 %v1103_v63, %v1103_v63  ;;  %v2572_v3 = vpop.f32.mrb[5].mxu0  ;;  %v2592_v5 = vpop.f32.mrb[5].mxu1 }
 0x265   : > { %v1018_v6 = vpop.f32.mrb[6].mxu0  ;;  %v1106_v7 = vpop.f32.mrb[6].mxu1 }
 0x266   : > { %v2593_v8 = vpop.f32.mrb[7].mxu1  ;;  %1262 = vrot.lane.b32.xlu1 %v3297_v2, %s2979_s13  ;;  %1213 = vrot.lane.b32.xlu0 %v3295_v0, %s2979_s13  ;;  %v2573_v9 = vpop.f32.mrb[7].mxu0 }
 0x2b8   : > { %v1115_v11 = vpop.permute.xlu1 %1114 }
 0x2b9   : > { %v1121_v12 = vsel %vm1116_vm2, %v1115_v11, 0 }
 0x2ba   : > { %2595 = vmatpush3.bf16.xpose.msra.mxu0 %v1121_v12 }
 0x2bb   : > { %2606 = vmatprep.subr.bf16.mxu0 %v2977_v4 }
 0x2bc   : > { %v1165_v13 = vpop.permute.xlu1 %1164 }
 0x2bd   : > { %v1170_v14 = vsel %vm1116_vm2, %v1165_v13, 0 }
 0x2be   : > { %2601 = vmatpush3.bf16.xpose.msra.mxu1 %v1170_v14 }
 0x2bf   : > { %2612 = vmatprep.subr.bf16.mxu1 %v2977_v4 }
 0x2c1   : > { %2597 = vmatmul.mubr.msk.bf16.vlgmr.msra.gmra.mrb[8].mxu0 %vm1116_vm2, %v1109_v54 }
 0x2c2   : > { %2608 = vmatprep.mubr.msk.bf16.mxu0 %vm2978_vm1, %v2977_v4 }
 0x2c5   : > { %2603 = vmatmul.mubr.msk.bf16.vlgmr.msra.gmra.mrb[8].mxu1 %vm1116_vm2, %v3292_v61 }
 0x2c6   : > { %2614 = vmatprep.mubr.msk.bf16.mxu1 %vm2978_vm1, %v2977_v4 }
 0x2d8   : > { %v1263_v15 = vpop.permute.xlu1 %1262  ;;  %v1214_v16 = vpop.permute.xlu0 %1213 }
 0x2d9   : > { %v1268_v17 = vsel %vm1116_vm2, %v1263_v15, 0  ;;  %v1219_v18 = vsel %vm1116_vm2, %v1214_v16, 0 }
 0x2da   : > { %2607 = vmatpush3.bf16.xpose.msra.mxu0 %v1219_v18  ;;  %2613 = vmatpush3.bf16.xpose.msra.mxu1 %v1268_v17 }
 0x2db   : > { %2618 = vmatprep.subr.bf16.mxu0 %v2977_v4  ;;  %2624 = vmatprep.subr.bf16.mxu1 %v2977_v4 }
 0x2e1   : > { %2609 = vmatmul.mubr.msk.bf16.vlgmr.msra.gmra.mrb[12].mxu0 %vm1116_vm2, %v3295_v0  ;;  %2615 = vmatmul.mubr.msk.bf16.vlgmr.msra.gmra.mrb[12].mxu1 %vm1116_vm2, %v3297_v2 }
 0x2e2   : > { %2620 = vmatprep.mubr.msk.bf16.mxu0 %vm2978_vm1, %v2977_v4  ;;  %2626 = vmatprep.mubr.msk.bf16.mxu1 %vm2978_vm1, %v2977_v4 }
 0x394   : > { %v1157_v19 = vpop.f32.mrb[8].mxu0 }
 0x395   : > { %v2598_v20 = vpop.f32.mrb[9].mxu0  ;;  %v1310_v21 = vsel %vm1116_vm2, %v1157_v19, -inf }
 0x396   : > { %1311 = vmax.xlane.f32.xlu1 %v1310_v21  ;;  %v1160_v22 = vpop.f32.mrb[10].mxu0 }
 0x397   : > { %v2599_v23 = vpop.f32.mrb[11].mxu0  ;;  %v1555_v22 = vld [vmem:[%s3160_s24] sm:$0xf] }
 0x398   : > { %v1206_v24 = vpop.f32.mrb[8].mxu1  ;;  %v1563_v23 = vsel %vm1363_vm3, %v1555_v22, 0  ;;  %v2843_v22 = vld [vmem:[%s3187_s19] sm:$0xff]  }
 0x399   : > { %v2604_v25 = vpop.f32.mrb[9].mxu1  ;;  %v1313_v26 = vsel %vm1116_vm2, %v1206_v24, -inf }
 0x39a   : > { %v1209_v27 = vpop.f32.mrb[10].mxu1  ;;  %1314 = vmax.xlane.f32.xlu0 %v1313_v26  ;;  %v1557_v26 = vld [vmem:[%s3160_s24 + $0x8] sm:$0xf] }
 0x39b   : > { %v2605_v28 = vpop.f32.mrb[11].mxu1 }
 0x3b0   : > { %1358 = vrot.lane.b32.xlu0 %v1109_v54, %s2980_s16 }
 0x3b4   : > { %v1255_v29 = vpop.f32.mrb[12].mxu0  ;;  %v1304_v30 = vpop.f32.mrb[12].mxu1 }
 0x3b5   : > { %v2610_v31 = vpop.f32.mrb[13].mxu0  ;;  %v2616_v32 = vpop.f32.mrb[13].mxu1  ;;  %v1316_v33 = vsel %vm1116_vm2, %v1255_v29, -inf  ;;  %v1319_v38 = vsel %vm1116_vm2, %v1304_v30, -inf }
 0x3b6   : > { %v1307_v34 = vpop.f32.mrb[14].mxu1  ;;  %1317 = vmax.xlane.f32.xlu1 %v1316_v33  ;;  %v1258_v35 = vpop.f32.mrb[14].mxu0  ;;  %v1558_v32 = vld [vmem:[%s3160_s24 + $0xc] sm:$0xf] }
 0x3b7   : > { %v2611_v36 = vpop.f32.mrb[15].mxu0  ;;  %v2617_v37 = vpop.f32.mrb[15].mxu1 }
 0x3b8   : > { %v1701_v37 = vsel %vm1363_vm3, %v1558_v32, 0 }
 0x3ba   : > { %1320 = vmax.xlane.f32.xlu1 %v1319_v38 }
 0x3cb   : > { %1407 = vrot.lane.b32.xlu1 %v3292_v61, %s2980_s16 }
 0x423   : > { %v1312_v39 = vpop.xlane.xlu1 %1311 }
 0x424   : > { %v1322_v40 = vsub.f32 %v1157_v19, %v1312_v39 }
 0x426   : > { %v1326_v41 = vmul.f32 1.442695, %v1322_v40 }
 0x427   : > { %v1315_v42 = vpop.xlane.xlu0 %1314 }
 0x428   : > { %2853 = vpow2.f32 %v1326_v41  ;;  %v1323_v43 = vsub.f32 %v1206_v24, %v1315_v42  ;;  %v1556_v24 = vld [vmem:[%s3160_s24 + $0x4] sm:$0xf] }
 0x429   : > { %v1609_v25 = vsel %vm1363_vm3, %v1556_v24, 0  ;;  %v2845_v24 = vld [vmem:[%s3187_s19 + $0x10] sm:$0xff]  }
 0x42a   : > { %v1328_v44 = vmul.f32 1.442695, %v1323_v43 }
 0x42b   : > { %v1359_v45 = vpop.permute.xlu0 %1358 }
 0x42c   : > { %2855 = vpow2.f32 %v1328_v44  ;;  %v1365_v46 = vsel %vm1363_vm3, %v1359_v45, 0 }
 0x42d   : > { %2619 = vmatpush3.bf16.msra.mxu0 %v1365_v46 }
 0x42e   : > { %2630 = vmatprep.subr.bf16.mxu0 %v2977_v4 }
 0x432   : > { %v2854_v47 = vpop.eup %2853 }
 0x433   : > { %v1334_v48 = vsel %vm1116_vm2, %v2854_v47, 0.0 }
 0x434   : > { %1335 = vadd.xlane.f32.xlu1 %v1334_v48 }
 0x436   : > { %v2856_v49 = vpop.eup %2855 }
 0x437   : > { %v1337_v50 = vsel %vm1116_vm2, %v2856_v49, 0.0 }
 0x438   : > { %1338 = vadd.xlane.f32.xlu1 %v1337_v50 }
 0x443   : > { %v1318_v51 = vpop.xlane.xlu1 %1317 }
 0x444   : > { %v1324_v52 = vsub.f32 %v1255_v29, %v1318_v51 }
 0x446   : > { %v1330_v53 = vmul.f32 1.442695, %v1324_v52 }
 0x447   : > { %v1321_v54 = vpop.xlane.xlu1 %1320 }
 0x448   : > { %2857 = vpow2.f32 %v1330_v53  ;;  %v1325_v55 = vsub.f32 %v1304_v30, %v1321_v54  ;;  %v1655_v30 = vsel %vm1363_vm3, %v1557_v26, 0 }
 0x44a   : > { %v1332_v56 = vmul.f32 1.442695, %v1325_v55 }
 0x44b   : > { %v1408_v57 = vpop.permute.xlu1 %1407 }
 0x44c   : > { %2859 = vpow2.f32 %v1332_v56  ;;  %v1413_v58 = vsel %vm1363_vm3, %v1408_v57, 0 }
 0x44d   : > { %2625 = vmatpush3.bf16.msra.mxu1 %v1413_v58 }
 0x44e   : > { %2636 = vmatprep.subr.bf16.mxu1 %v2977_v4 }
 0x452   : > { %v2858_v59 = vpop.eup %2857 }
 0x453   : > { %v1340_v60 = vsel %vm1116_vm2, %v2858_v59, 0.0 }
 0x454   : > { %1341 = vadd.xlane.f32.xlu0 %v1340_v60 }
 0x456   : > { %v2860_v61 = vpop.eup %2859 }
 0x457   : > { %v1343_v62 = vsel %vm1116_vm2, %v2860_v61, 0.0 }
 0x458   : > { %1344 = vadd.xlane.f32.xlu1 %v1343_v62 }
 0x469   : > { %1455 = vrot.lane.b32.xlu1 %v3295_v0, %s2980_s16 }
 0x46a   : > { %1503 = vrot.lane.b32.xlu0 %v3297_v2, %s2980_s16 }
 0x4c1   : > { %v1336_v63 = vpop.xlane.xlu1 %1335 }
 0x4c2   : > { %2861 = vrcp.f32 %v1336_v63 }
 0x4c5   : > { %v1339_v3 = vpop.xlane.xlu1 %1338 }
 0x4c6   : > { %2863 = vrcp.f32 %v1339_v3 }
 0x4cc   : > { %v2862_v5 = vpop.eup %2861 }
 0x4cd   : > { %v1350_v6 = vmul.f32 %v2862_v5, %v2854_v47  ;;  %v2388_v5 = vld [vmem:[%s3587_s28] ss:$0 sm:$0xff] }
 0x4cf   : > { %v1354_v7 = vpack.c.bf16 %v1350_v6, %v1350_v6 }
 0x4d0   : > { %v2864_v8 = vpop.eup %2863 }
 0x4d1   : > { %v1351_v9 = vmul.f32 %v2864_v8, %v2856_v49  ;;  %2621 = vmatmul.mubr.msk.bf16.vlgmr.msra.gmra.mrb[16].mxu0 %vm1116_vm2, %v1354_v7 }
 0x4d2   : > { %2632 = vmatprep.mubr.msk.bf16.mxu0 %vm2978_vm1, %v2977_v4 }
 0x4d3   : > { %v1355_v11 = vpack.c.bf16 %v1351_v9, %v1351_v9 }
 0x4d5   : > { %2627 = vmatmul.mubr.msk.bf16.vlgmr.msra.gmra.mrb[16].mxu1 %vm1116_vm2, %v1355_v11 }
 0x4d6   : > { %2638 = vmatprep.mubr.msk.bf16.mxu1 %vm2978_vm1, %v2977_v4 }
 0x4e1   : > { %v1342_v0 = vpop.xlane.xlu0 %1341 }
 0x4e2   : > { %2865 = vrcp.f32 %v1342_v0 }
 0x4e5   : > { %v1504_v2 = vpop.permute.xlu0 %1503  ;;  %v1345_v12 = vpop.xlane.xlu1 %1344 }
 0x4e6   : > { %v1509_v13 = vsel %vm1363_vm3, %v1504_v2, 0  ;;  %2867 = vrcp.f32 %v1345_v12  ;;  %v2835_v2 = vld [vmem:[%s3182_s18] sm:$0xff]   ;;  %v2836_v12 = vld [vmem:[%s3182_s18 + $0x8] sm:$0xff]  }
 0x4e7   : > { %2637 = vmatpush3.bf16.msra.mxu1 %v1509_v13 }
 0x4e8   : > { %2648 = vmatprep.subr.bf16.mxu1 %v2977_v4 }
 0x4e9   : > { %v1456_v14 = vpop.permute.xlu1 %1455 }
 0x4ea   : > { %v1461_v15 = vsel %vm1363_vm3, %v1456_v14, 0 }
 0x4eb   : > { %2631 = vmatpush3.bf16.msra.mxu0 %v1461_v15 }
 0x4ec   : > { %v2866_v16 = vpop.eup %2865  ;;  %2642 = vmatprep.subr.bf16.mxu0 %v2977_v4 }
 0x4ed   : > { %v1352_v17 = vmul.f32 %v2866_v16, %v2858_v59 }
 0x4ef   : > { %v1356_v18 = vpack.c.bf16 %v1352_v17, %v1352_v17  ;;  %v2837_v17 = vld [vmem:[%s3182_s18 + $0x10] sm:$0xff]  }
 0x4f0   : > { %v2868_v19 = vpop.eup %2867 }
 0x4f1   : > { %v1353_v20 = vmul.f32 %v2868_v19, %v2860_v61  ;;  %2633 = vmatmul.mubr.msk.bf16.vlgmr.msra.gmra.mrb[20].mxu0 %vm1116_vm2, %v1356_v18  ;;  %v2838_v18 = vld [vmem:[%s3182_s18 + $0x18] sm:$0xff]   ;;  %v2839_v19 = vld [vmem:[%s3182_s18 + $0x20] sm:$0xff]  }
 0x4f2   : > { %2644 = vmatprep.mubr.msk.bf16.mxu0 %vm2978_vm1, %v2977_v4  ;;  %2643 = vmatpush3.bf16.msra.mxu0 %v1563_v23  ;;  %v2844_v23 = vld [vmem:[%s3187_s19 + $0x8] sm:$0xff]  }
 0x4f3   : > { %v1357_v21 = vpack.c.bf16 %v1353_v20, %v1353_v20  ;;  %2654 = vmatprep.subr.bf16.mxu0 %v2977_v4  ;;  %v2841_v20 = vld [vmem:[%s3182_s18 + $0x30] sm:$0xff]  }
 0x4f5   : > { %2639 = vmatmul.mubr.msk.bf16.vlgmr.msra.gmra.mrb[20].mxu1 %vm1116_vm2, %v1357_v21  ;;  %v2842_v21 = vld [vmem:[%s3182_s18 + $0x38] sm:$0xff]  }
 0x4f6   : > { %2650 = vmatprep.mubr.msk.bf16.mxu1 %vm2978_vm1, %v2977_v4  ;;  %2649 = vmatpush3.bf16.msra.mxu1 %v1609_v25 }
 0x4f7   : > { %2660 = vmatprep.subr.bf16.mxu1 %v2977_v4 }
 0x5a4   : > { %v1401_v27 = vpop.f32.mrb[16].mxu0 }
 0x5a5   : > { %v1551_v28 = vpack.c.bf16 %v1401_v27, %v1401_v27  ;;  %v2622_v29 = vpop.f32.mrb[17].mxu0 }
 0x5a6   : > { %v1404_v31 = vpop.f32.mrb[18].mxu0  ;;  %v2389_v29 = vld [vmem:[%s633_s29] ss:$0 sm:$0xff] }
 0x5a7   : > { %v2623_v33 = vpop.f32.mrb[19].mxu0  ;;  %2645 = vmatmul.mubr.msk.bf16.vlgmr.msra.gmra.mrb[24].mxu0 %vm1116_vm2, %v1551_v28  ;;  %v2390_v31 = vld [vmem:[%s3588_s22] ss:$0 sm:$0xff] }
 0x5a8   : > { %v1449_v34 = vpop.f32.mrb[16].mxu1  ;;  %2655 = vmatpush3.bf16.msra.mxu0 %v1655_v30  ;;  %2656 = vmatprep.mubr.msk.bf16.mxu0 %vm2978_vm1, %v2977_v4 }
 0x5a9   : > { %v1552_v35 = vpack.c.bf16 %v1449_v34, %v1449_v34  ;;  %v2628_v36 = vpop.f32.mrb[17].mxu1  ;;  %2666 = vmatprep.subr.bf16.mxu0 %v2977_v4 }
 0x5aa   : > { %v1452_v38 = vpop.f32.mrb[18].mxu1  ;;  %v2847_v36 = vld [vmem:[%s3187_s19 + $0x20] sm:$0xff]  }
 0x5ab   : > { %v2629_v39 = vpop.f32.mrb[19].mxu1  ;;  %2651 = vmatmul.mubr.msk.bf16.vlgmr.msra.gmra.mrb[24].mxu1 %vm1116_vm2, %v1552_v35  ;;  %v2846_v35 = vld [vmem:[%s3187_s19 + $0x18] sm:$0xff]   ;;  %v2849_v38 = vld [vmem:[%s3187_s19 + $0x30] sm:$0xff]  }
 0x5ac   : > { %2661 = vmatpush3.bf16.msra.mxu1 %v1701_v37  ;;  %2662 = vmatprep.mubr.msk.bf16.mxu1 %vm2978_vm1, %v2977_v4  ;;  %v2848_v37 = vld [vmem:[%s3187_s19 + $0x28] sm:$0xff]   ;;  %v2850_v39 = vld [vmem:[%s3187_s19 + $0x38] sm:$0xff]  }
 0x5ad   : > { %2686 = vmatprep.subr.bf16.mxu1 %v2977_v4 }
 0x5c4   : > { %v1497_v40 = vpop.f32.mrb[20].mxu0 }
 0x5c5   : > { %v1553_v41 = vpack.c.bf16 %v1497_v40, %v1497_v40  ;;  %v2634_v42 = vpop.f32.mrb[21].mxu0  ;;  %v2391_v40 = vld [vmem:[%s644_s3] ss:$0 sm:$0xff]  ;;  %s3589_s3 = sld [smem:[#allocation9_spill]] }
 0x5c6   : > { %v1500_v43 = vpop.f32.mrb[22].mxu0 }
 0x5c7   : > { %v2635_v44 = vpop.f32.mrb[23].mxu0  ;;  %2657 = vmatmul.mubr.msk.bf16.vlgmr.msra.gmra.mrb[28].mxu0 %vm1116_vm2, %v1553_v41 }
 0x5c8   : > { %v1545_v45 = vpop.f32.mrb[20].mxu1  ;;  %2682 = vmatprep.mubr.msk.bf16.mxu0 %vm2978_vm1, %v2977_v4  ;;  %2667 = vmatpush3.bf16.msra.mxu0 %v2835_v2 }
 0x5c9   : > { %v1554_v46 = vpack.c.bf16 %v1545_v45, %v1545_v45  ;;  %v2640_v47 = vpop.f32.mrb[21].mxu1  ;;  %2668 = vmatprep.subr.bf16.mxu0 %v2977_v4 }
 0x5ca   : > { %v1548_v48 = vpop.f32.mrb[22].mxu1 }
 0x5cb   : > { %v2641_v49 = vpop.f32.mrb[23].mxu1  ;;  %2663 = vmatmul.mubr.msk.bf16.vlgmr.msra.gmra.mrb[28].mxu1 %vm1116_vm2, %v1554_v46  ;;  %p2409_p1 = scmp.ne.s32.totalorder %s3589_s3, 1 }
 0x5cc   : > { %2702 = vmatprep.mubr.msk.bf16.mxu1 %vm2978_vm1, %v2977_v4  ;;  %2669 = vmatpush3.bf16.msra.mxu0 %v2836_v12  ;;  %s3590_s13 = sld [smem:[#allocation21_spill]] (!%p2409_p1)  ;;  %vm2982_vm4 = vmmov (!%p2409_p1), 0   ;;  %s3591_s25 = sld [smem:[#allocation22_spill]] (!%p2409_p1) }
 0x5cd   : > { %2670 = vmatprep.subr.bf16.mxu0 %v2977_v4  ;;  %2687 = vmatpush3.bf16.msra.mxu1 %v2843_v22 }
 0x5ce   : > { %2688 = vmatprep.subr.bf16.mxu1 %v2977_v4 }
 0x5d0   : > { %2671 = vmatpush3.bf16.msra.mxu0 %v2837_v17 }
 0x5d1   : > { %2672 = vmatprep.subr.bf16.mxu0 %v2977_v4  ;;  %2689 = vmatpush3.bf16.msra.mxu1 %v2844_v23 }
 0x5d2   : > { %2690 = vmatprep.subr.bf16.mxu1 %v2977_v4 }
 0x5d4   : > { %2673 = vmatpush3.bf16.msra.mxu0 %v2838_v18 }
 0x5d5   : > { %2674 = vmatprep.subr.bf16.mxu0 %v2977_v4  ;;  %2691 = vmatpush3.bf16.msra.mxu1 %v2845_v24 }
 0x5d6   : > { %2692 = vmatprep.subr.bf16.mxu1 %v2977_v4 }
 0x5d8   : > { %2675 = vmatpush3.bf16.msra.mxu0 %v2839_v19 }
 0x5d9   : > { %2676 = vmatprep.subr.bf16.mxu0 %v2977_v4  ;;  %2693 = vmatpush3.bf16.msra.mxu1 %v2846_v35 }
 0x5da   : > { %2694 = vmatprep.subr.bf16.mxu1 %v2977_v4 }
 0x5dc   : > { %2677 = vmatpush3.bf16.msra.mxu0 %v2840_v10 }
 0x5dd   : > { %2678 = vmatprep.subr.bf16.mxu0 %v2977_v4  ;;  %2695 = vmatpush3.bf16.msra.mxu1 %v2847_v36 }
 0x5de   : > { %2696 = vmatprep.subr.bf16.mxu1 %v2977_v4 }
 0x5e0   : > { %2679 = vmatpush3.bf16.msra.mxu0 %v2841_v20 }
 0x5e1   : > { %2680 = vmatprep.subr.bf16.mxu0 %v2977_v4  ;;  %2697 = vmatpush3.bf16.msra.mxu1 %v2848_v37 }
 0x5e2   : > { %2698 = vmatprep.subr.bf16.mxu1 %v2977_v4 }
 0x5e4   : > { %2681 = vmatpush3.bf16.msra.mxu0 %v2842_v21 }
 0x5e5   : > { %2699 = vmatpush3.bf16.msra.mxu1 %v2849_v38 }
 0x5e6   : > { %2700 = vmatprep.subr.bf16.mxu1 %v2977_v4 }
 0x5e9   : > { %2701 = vmatpush3.bf16.msra.mxu1 %v2850_v39 }
 0x67a   : > { %v1599_v50 = vpop.f32.mrb[24].mxu0 }
 0x67b   : > { %v2646_v51 = vpop.f32.mrb[25].mxu0 }
 0x67c   : > { %v1602_v52 = vpop.f32.mrb[26].mxu0  ;;  %v2400_v51 = vld [vmem:[%s652_s14] ss:$0 sm:$0xff] }
 0x67d   : > { %v2647_v53 = vpop.f32.mrb[27].mxu0 }
 0x67e   : > { %v1645_v54 = vpop.f32.mrb[24].mxu1 }
 0x67f   : > { %v1743_v55 = vadd.f32 %v1645_v54, %v1599_v50  ;;  %v2652_v56 = vpop.f32.mrb[25].mxu1 }
 0x680   : > { %v1648_v57 = vpop.f32.mrb[26].mxu1 }
 0x681   : > { %v2653_v58 = vpop.f32.mrb[27].mxu1 }
 0x682   : > { %v2873_v58 = vld [vmem:[%s3590_s13] sm:$0xff] (!%p2409_p1)  }
 0x69a   : > { %v1691_v59 = vpop.f32.mrb[28].mxu0 }
 0x69b   : > { %v1744_v60 = vadd.f32 %v1743_v55, %v1691_v59  ;;  %v2658_v61 = vpop.f32.mrb[29].mxu0  ;;  %v2981_v59 = vmov (!%p2409_p1), 0.0  }
 0x69c   : > { %v1694_v62 = vpop.f32.mrb[30].mxu0  ;;  %2706 = vmatprep.subr.bf16.mxu0 (!%p2409_p1), %v2981_v59  ;;  %v2875_v61 = vld [vmem:[%s3590_s13 + $0x10] sm:$0xff] (!%p2409_p1)  }
 0x69d   : > { %v2659_v63 = vpop.f32.mrb[31].mxu0  ;;  %v2876_v62 = vld [vmem:[%s3590_s13 + $0x18] sm:$0xff] (!%p2409_p1)  }
 0x69e   : > { %v1737_v3 = vpop.f32.mrb[28].mxu1  ;;  %v2877_v63 = vld [vmem:[%s3590_s13 + $0x20] sm:$0xff] (!%p2409_p1)  }
 0x69f   : > { %v1745_v6 = vadd.f32 %v1744_v60, %v1737_v3  ;;  %v2664_v7 = vpop.f32.mrb[29].mxu1  ;;  %v2874_v60 = vld [vmem:[%s3590_s13 + $0x8] sm:$0xff] (!%p2409_p1)  }
 0x6a0   : > { %v1740_v8 = vpop.f32.mrb[30].mxu1  ;;  %v2878_v3 = vld [vmem:[%s3590_s13 + $0x28] sm:$0xff] (!%p2409_p1)  }
 0x6a1   : > { %v1753_v9 = vadd.f32 %v2388_v5, %v1745_v6  ;;  %v2665_v11 = vpop.f32.mrb[31].mxu1  ;;  %v2879_v5 = vld [vmem:[%s3590_s13 + $0x30] sm:$0xff] (!%p2409_p1)   ;;  %v2880_v6 = vld [vmem:[%s3590_s13 + $0x38] sm:$0xff] (!%p2409_p1)   ;;  %v2410_v8 = vld [vmem:[%s3591_s25] ss:$0 sm:$0xff] (!%p2409_p1) }
 0x6a3   : > { %v3389_v0 = vadd.f32 %v1753_v9, %v3195_v1 }
 0x6a5   : > { %1757 = vadd.xlane.f32.xlu1 %v3389_v0 }
 0x732   : > { %v1758_v13 = vpop.xlane.xlu1 %1757 }
 0x733   : > { %v1759_v14 = vmul.f32 0.03125, %v1758_v13 }
 0x735   : > { %v1760_v15 = vsub.f32 %v3389_v0, %v1759_v14 }
 0x737   : > { %v1761_v1 = vsel %vm668_vm0, %v1760_v15, 0.0 }
 0x738   : > { %v1762_v16 = vmul.f32 %v1761_v1, %v1761_v1 }
 0x73a   : > { %1763 = vadd.xlane.f32.xlu0 %v1762_v16 }
 0x7c7   : > { %v1764_v25 = vpop.xlane.xlu0 %1763 }
 0x7c8   : > { %v1765_v26 = vmul.f32 0.03125, %v1764_v25 }
 0x7ca   : > { %v1766_v27 = vadd.f32 1e-05, %v1765_v26 }
 0x7cc   : > { %2869 = vrsqrt.f32 %v1766_v27 }
 0x7d6   : > { %v2870_v28 = vpop.eup %2869 }
 0x7d7   : > { %v1768_v30 = vmul.f32 %v2870_v28, %v1761_v1 }
 0x7d9   : > { %v1775_v32 = vmul.f32 %v2389_v29, %v1768_v30 }
 0x7db   : > { %v1782_v33 = vadd.f32 %v2390_v31, %v1775_v32 }
 0x7dd   : > { %v1783_v34 = vpack.c.bf16 %v1782_v33, %v1782_v33 }
 0x7df   : > { %2683 = vmatmul.mubr.bf16.vlgmr.msra.gmra.mrb[32].mxu0 %v1783_v34 }
 0x7e0   : > { %2707 = vmatpush3.bf16.msra.mxu0 (!%p2409_p1), %v2873_v58  ;;  %2722 = vmatprep.mubr.msk.bf16.mxu0 (!%p2409_p1), %vm2982_vm4, %v2981_v59 }
 0x7e1   : > { %2708 = vmatprep.subr.bf16.mxu0 (!%p2409_p1), %v2981_v59 }
 0x7e4   : > { %2709 = vmatpush3.bf16.msra.mxu0 (!%p2409_p1), %v2874_v60 }
 0x7e5   : > { %2710 = vmatprep.subr.bf16.mxu0 (!%p2409_p1), %v2981_v59 }
 0x7e8   : > { %2711 = vmatpush3.bf16.msra.mxu0 (!%p2409_p1), %v2875_v61 }
 0x7e9   : > { %2712 = vmatprep.subr.bf16.mxu0 (!%p2409_p1), %v2981_v59 }
 0x7ec   : > { %2713 = vmatpush3.bf16.msra.mxu0 (!%p2409_p1), %v2876_v62 }
 0x7ed   : > { %2714 = vmatprep.subr.bf16.mxu0 (!%p2409_p1), %v2981_v59 }
 0x7f0   : > { %2715 = vmatpush3.bf16.msra.mxu0 (!%p2409_p1), %v2877_v63 }
 0x7f1   : > { %2716 = vmatprep.subr.bf16.mxu0 (!%p2409_p1), %v2981_v59 }
 0x7f4   : > { %2717 = vmatpush3.bf16.msra.mxu0 (!%p2409_p1), %v2878_v3 }
 0x7f5   : > { %2718 = vmatprep.subr.bf16.mxu0 (!%p2409_p1), %v2981_v59 }
 0x7f8   : > { %2719 = vmatpush3.bf16.msra.mxu0 (!%p2409_p1), %v2879_v5 }
 0x7f9   : > { %2720 = vmatprep.subr.bf16.mxu0 (!%p2409_p1), %v2981_v59 }
 0x7fc   : > { %2721 = vmatpush3.bf16.msra.mxu0 (!%p2409_p1), %v2880_v6 }
 0x8b2   : > { %v1889_v41 = vpop.f32.mrb[32].mxu0 }
 0x8b3   : > { %v1890_v42 = vadd.f32 %v2391_v40, %v1889_v41  ;;  %v2684_v43 = vpop.f32.mrb[33].mxu0 }
 0x8b4   : > { %v1892_v44 = vpop.f32.mrb[34].mxu0 }
 0x8b5   : > { %v1896_v45 = vmul.f32 0.70710677, %v1890_v42  ;;  %v2685_v46 = vpop.f32.mrb[35].mxu0  ;;  %v1895_v48 = vmul.f32 0.5, %v1890_v42 }
 0x8b7   : > { %2871 = verf.f32 %v1896_v45 }
 0x8c1   : > { %v2872_v47 = vpop.eup %2871 }
 0x8c2   : > { %v1898_v49 = vadd.f32 1.0, %v2872_v47 }
 0x8c4   : > { %v1899_v50 = vmul.f32 %v1898_v49, %v1895_v48 }
 0x8c6   : > { %v1900_v4 = vpack.c.bf16 %v1899_v50, %v1899_v50 }
 0x8c8   : > { %2703 = vmatmul.mubr.bf16.vlgmr.msra.gmra.mrb[32].mxu1 %v1900_v4 }
 0x99a   : > { %2017 = sbr.rel (%p2409_p1) target bundleno = 2681 (0xa79), region = 84 }
 0x99b   : > { %v2006_v52 = vpop.f32.mrb[32].mxu1 }
 0x99c   : > { %v2007_v53 = vadd.f32 %v2400_v51, %v2006_v52  ;;  %v2704_v54 = vpop.f32.mrb[33].mxu1 }
 0x99d   : > { %v2009_v55 = vpop.f32.mrb[34].mxu1 }
 0x99e   : > { %v2012_v56 = vadd.f32 %v2007_v53, %v3389_v0  ;;  %v2705_v57 = vpop.f32.mrb[35].mxu1 }
 0x9a0   : > { %2013 = vst [vmem:[#allocation2] sm:$0xff] %v2012_v56  ;;  %v2018_v7 = vpack.c.bf16 (!%p2409_p1), %v2012_v56, %v2012_v56 }
 0x9a2   : > { %2723 = vmatmul.mubr.bf16.vlgmr.msra.gmra.mrb[0].mxu0 %v2018_v7 }
 0xa75   : > { %v2124_v9 = vpop.f32.mrb[0].mxu0 }
 0xa76   : > { %v2125_v11 = vadd.f32 %v2410_v8, %v2124_v9  ;;  %v2724_v0 = vpop.f32.mrb[1].mxu0 }
 0xa77   : > { %v2127_v2 = vpop.f32.mrb[2].mxu0 }
 0xa78   : > { %2130 = vst [vmem:[%s607_s20] sm:$0xff] %v2125_v11  ;;  %v2725_v12 = vpop.f32.mrb[3].mxu0 }
 0xa79 PF: > { %s3592_s12 = sld [smem:[#allocation10_spill]]  ;;  %s3593_s26 = sld [smem:[#allocation7_spill]] }
 0xa7a   : > { %s3595_s28 = sld [smem:[#allocation23_spill]]  ;;  %s2145_s15 = sshll.u32 %s607_s20, 4  ;;  %s2146_s15 = int_to_ptr.vmem [resolvable:$true] %s2145_s15 }
 0xa7b   : > { %s2881_s22 = scalar_lea.vmem %s2146_s15, 128  ;;  %s2983_s29 = smov [#allocation3]  }
 0xa7c   : > { %p2882_p2 = scmp.ne.s32.totalorder %s2146_s15, %s2881_s22  ;;  %s2885_s30 = sshll.u32 %s2983_s29, 4  ;;  %s2886_s30 = int_to_ptr.vmem [resolvable:$false] %s2885_s30 }
 0xa7d   : > { %s2887_s19 = scalar_lea.vmem %s2886_s30, 256  ;;  %p2888_p6 = scmp.lt.s32.totalorder %s2146_s15, %s2886_s30 }
 0xa7e   : > { %p2883_p4 = pnand %p2882_p2, %p3108_p3  ;;  %p2889_p7 = scmp.lt.s32.totalorder %s2887_s19, %s2881_s22 }
 0xa7f   : > { %s2420_s16 = sshll.u32 %s3592_s12, 7  ;;  %s3596_s21 = sand.u32 1, %s3593_s26  }
 0xa80   : > { %s3480_s18 = scalar_lea.hbm %s3595_s28, %s2420_s16  ;;  %s2132_s0 = scalar_lea.sflag [#allocation4], %s3596_s21 }
 0xa81   : > { %p2884_p5 = pneg %p2883_p4  ;;  %p2890_p8 = por %p2889_p7, %p2888_p6 }
 0xa83   : > { %p2891_p10 = pnand %p2890_p8, %p2884_p5 }
 0xa85   : > { %2894 = shalt.err (!%p2891_p10)
}
 0xa86   : > { %s2895_s23 = scalar_lea.hbm %s3480_s18, 128  ;;  %s2899_s3 = scalar_lea.hbm %s3595_s28, 256 }
 0xa87   : > { %p2896_p11 = scmp.ne.s32.totalorder %s3480_s18, %s2895_s23  ;;  %p2900_p0 = scmp.lt.u32.totalorder %s3480_s18, %s3595_s28 }
 0xa88   : > { %p2901_p1 = scmp.lt.u32.totalorder %s2899_s3, %s2895_s23  ;;  %p2903_p4 = scmp.lt.u32.totalorder %s2895_s23, %s3480_s18 }
 0xa89   : > { %p2897_p12 = pnand %p2896_p11, %p3108_p3 }
 0xa8a   : > { %p2902_p2 = por %p2901_p1, %p2900_p0 }
 0xa8b   : > { %p2898_p13 = pneg %p2897_p12 }
 0xa8c   : > { %p2904_p5 = por %p2903_p4, %p2902_p2 }
 0xa8e   : > { %p2905_p6 = pnand %p2904_p5, %p2898_p13 }
 0xa90   : > { %2908 = shalt.err (!%p2905_p6)
}
 0xa91   : > { %2726 = dma.vmem_to_hbm [thread:$0]  (%p3108_p3), %s2146_s15, 128, %s3480_s18, %s2132_s0  }
 0xa92 PF: > { %s3597_s26 = sld [smem:[#allocation13_spill]]  ;;  %s3598_s16 = sld [smem:[#allocation6_spill]] }
 0xa98   : > { %p2732_p7 = scmp.ge.s32.totalorder %s3597_s26, 2  ;;  %s2157_s27 = sand.u32 1, %s3598_s16  }
 0xa99   : > { %s2158_s21 = scalar_lea.sflag [#allocation4], %s2157_s27 }
 0xa9a   : > { %p2729_p8 = pnand %p2732_p7, %p3118_p9 }
 0xa9c   : > { %2942 = dma.done.wait (!%p2729_p8), %s2158_s21, 128  }
 0xa9d   : > { %2944 = vsyncadd (!%p2729_p8), %s2158_s21, 4294967168  ;;  %s27_s20 = sadd.s32 1, %s3597_s26   ;;  %s3600_s29 = sld [smem:[#allocation7_spill]] }
 0xa9e   : > { %p24_p10 = scmp.ge.s32.totalorder %s27_s20, 6   ;;  %s3601_s30 = sld [smem:[#allocation8_spill]] }
 0xa9f   : > { %s3602_s15 = sld [smem:[#allocation18_spill]]  ;;  %s3603_s16 = sld [smem:[#allocation11_spill]] }
 0xaa0   : > { %s3604_s17 = sld [smem:[#allocation12_spill]]  ;;  %s3605_s18 = sld [smem:[#allocation14_spill]] }
 0xaa1   : > { %s3606_s19 = sld [smem:[#allocation16_spill]]  ;;  %26 = sbr.rel (!%p24_p10) target bundleno = 11 (0xb), region = 152 }
 0xaa8   :  { %2163 = vsyncpa [#allocation4], 1 }
 0xaa9   :  { %2165 = vsyncpa [#allocation4 + $0x1], 1 }

</bundles_post_ra>
